<compile_context>
chip_gen: v7x
topology: tpu7x:2x2x1
jax: 0.10.0
libtpu: 0.0.40
codegen_flags: <defaults>
</compile_context>

<pallas_src>
import jax
import jax.numpy as jnp
from jax import lax
from jax.experimental import pallas as pl
from jax.experimental.pallas import tpu as pltpu


# ------------------------------ Pallas kernels ------------------------------

def _conv_block_kernel(x_ref, w1_ref, b1_ref, w2_ref, b2_ref, o_ref,
                       y1_ref, y2_ref):
    """Per-image fused conv1+relu -> conv2+relu -> 2x2 maxpool.

    x_ref  : [28, 28, 3]   bf16 (NHWC, one image)
    w1_ref : [9, 3, 32]    bf16 (tap-major: index = kh*3+kw, then (cin, cout))
    b1_ref : [1, 32]       f32
    w2_ref : [9, 32, 64]   bf16
    b2_ref : [1, 64]       f32
    o_ref  : [12, 12, 64]  bf16 (pooled NHWC activations)
    y1_ref : [26, 26, 32]  bf16 VMEM scratch (conv1 output)
    y2_ref : [24, 24, 64]  f32  VMEM scratch (conv2 output)
    """
    # ---- conv1 + ReLU: one output row per iteration, 9 tap-matmuls per row ----
    def conv1_row(h, carry):
        acc = jnp.zeros((26, 32), jnp.float32)
        for i in range(3):
            for j in range(3):
                patch = x_ref[h + i, pl.ds(j, 26), :]            # [26, 3] bf16
                acc += jnp.dot(patch, w1_ref[3 * i + j],
                               preferred_element_type=jnp.float32)
        y1_ref[h] = jnp.maximum(acc + b1_ref[...], 0.0).astype(y1_ref.dtype)
        return carry

    lax.fori_loop(0, 26, conv1_row, 0)

    # ---- conv2 + ReLU ----
    def conv2_row(h, carry):
        acc = jnp.zeros((24, 64), jnp.float32)
        for i in range(3):
            for j in range(3):
                patch = y1_ref[h + i, pl.ds(j, 24), :]           # [24, 32] bf16
                acc += jnp.dot(patch, w2_ref[3 * i + j],
                               preferred_element_type=jnp.float32)
        y2_ref[h] = jnp.maximum(acc + b2_ref[...], 0.0)
        return carry

    lax.fori_loop(0, 24, conv2_row, 0)

    # ---- 2x2 max pool (stride 2), written as pooled NHWC rows ----
    def pool_row(h, carry):
        r0e = y2_ref[2 * h,     pl.ds(0, 12, stride=2), :]       # [12, 64]
        r0o = y2_ref[2 * h,     pl.ds(1, 12, stride=2), :]
        r1e = y2_ref[2 * h + 1, pl.ds(0, 12, stride=2), :]
        r1o = y2_ref[2 * h + 1, pl.ds(1, 12, stride=2), :]
        m = jnp.maximum(jnp.maximum(r0e, r0o), jnp.maximum(r1e, r1o))
        o_ref[h] = m.astype(o_ref.dtype)
        return carry

    lax.fori_loop(0, 12, pool_row, 0)


def _fc_tail_kernel(x_ref, w1_ref, b1_ref, w2_ref, b2_ref, o_ref, acc_ref):
    """K-tiled fc1 (+bias+ReLU) fused with fc2 + log_softmax.

    Grid: (K // TK,) reduction over fc1's contraction dimension.
    x_ref  : [Mp, TK]   bf16
    w1_ref : [TK, 128]  bf16
    b1_ref : [1, 128]   f32
    w2_ref : [128, 10]  bf16
    b2_ref : [1, 10]    f32
    o_ref  : [Mp, 10]   f32
    acc_ref: [Mp, 128]  f32 VMEM accumulator
    """
    k = pl.program_id(0)

    @pl.when(k == 0)
    def _():
        acc_ref[...] = jnp.zeros_like(acc_ref)

    acc_ref[...] += jnp.dot(x_ref[...], w1_ref[...],
                            preferred_element_type=jnp.float32)

    @pl.when(k == pl.num_programs(0) - 1)
    def _():
        h = jnp.maximum(acc_ref[...] + b1_ref[...], 0.0)          # fc1 + ReLU
        z = jnp.dot(h.astype(w2_ref.dtype), w2_ref[...],
                    preferred_element_type=jnp.float32) + b2_ref[...]
        zmax = jnp.max(z, axis=-1, keepdims=True)
        lse = jnp.log(jnp.sum(jnp.exp(z - zmax), axis=-1, keepdims=True)) + zmax
        o_ref[...] = (z - lse).astype(o_ref.dtype)                # log_softmax


# ------------------------------ kernel wrappers ------------------------------

def conv_block(x_nhwc, w1, b1, w2, b2):
    """x_nhwc: [B, 28, 28, 3] bf16 -> pooled NHWC activations [B, 12, 12, 64] bf16."""
    B = x_nhwc.shape[0]
    flops = B * (2 * 26 * 26 * 27 * 32 + 2 * 24 * 24 * (9 * 32) * 64)
    bytes_accessed = (B * (28 * 28 * 3 * 2 + 12 * 12 * 64 * 2)
                      + (9 * 3 * 32 + 9 * 32 * 64) * 2 + (32 + 64) * 4)
    return pl.pallas_call(
        _conv_block_kernel,
        out_shape=jax.ShapeDtypeStruct((B, 12, 12, 64), jnp.bfloat16),
        grid=(B,),
        in_specs=[
            pl.BlockSpec((None, 28, 28, 3), lambda b: (b, 0, 0, 0)),
            pl.BlockSpec((9, 3, 32), lambda b: (0, 0, 0)),
            pl.BlockSpec((1, 32), lambda b: (0, 0)),
            pl.BlockSpec((9, 32, 64), lambda b: (0, 0, 0)),
            pl.BlockSpec((1, 64), lambda b: (0, 0)),
        ],
        out_specs=pl.BlockSpec((None, 12, 12, 64), lambda b: (b, 0, 0, 0)),
        scratch_shapes=[pltpu.VMEM((26, 26, 32), jnp.bfloat16),
                        pltpu.VMEM((24, 24, 64), jnp.float32)],
        compiler_params=pltpu.CompilerParams(
            dimension_semantics=("parallel",),
            vmem_limit_bytes=32 * 1024 * 1024),
        cost_estimate=pl.CostEstimate(flops=flops, transcendentals=0,
                                      bytes_accessed=bytes_accessed),
    )(x_nhwc, w1, b1, w2, b2)


def fc_tail(flat, w1, b1, w2, b2, *, tk=2304):
    """flat: [B, 9216] (NHWC flatten order) -> log_softmax logits [B, 10] f32."""
    B, K = flat.shape
    assert K % tk == 0
    Mp = ((max(B, 16) + 15) // 16) * 16           # sublane-aligned row count
    x = flat.astype(jnp.bfloat16)
    if Mp != B:
        x = jnp.pad(x, ((0, Mp - B), (0, 0)))
    nsteps = K // tk
    flops = 2 * Mp * K * 128 + 2 * Mp * 128 * 10
    bytes_accessed = (Mp * K * 2 + K * 128 * 2 + 128 * 10 * 2
                      + Mp * 10 * 4 + 128 * 4 + 10 * 4)
    out = pl.pallas_call(
        _fc_tail_kernel,
        out_shape=jax.ShapeDtypeStruct((Mp, 10), jnp.float32),
        grid=(nsteps,),
        in_specs=[
            pl.BlockSpec((Mp, tk), lambda k: (0, k)),
            pl.BlockSpec((tk, 128), lambda k: (k, 0)),
            pl.BlockSpec((1, 128), lambda k: (0, 0)),
            pl.BlockSpec((128, 10), lambda k: (0, 0)),
            pl.BlockSpec((1, 10), lambda k: (0, 0)),
        ],
        out_specs=pl.BlockSpec((Mp, 10), lambda k: (0, 0)),
        scratch_shapes=[pltpu.VMEM((Mp, 128), jnp.float32)],
        compiler_params=pltpu.CompilerParams(
            dimension_semantics=("arbitrary",),
            vmem_limit_bytes=32 * 1024 * 1024),
        cost_estimate=pl.CostEstimate(flops=flops, transcendentals=Mp * 10,
                                      bytes_accessed=bytes_accessed),
    )(x, w1, b1, w2, b2)
    return out[:B]


# ------------------------------ params & forward -----------------------------

def init_params(key):
    ks = jax.random.split(key, 8)
    s = 0.05
    return {
        "conv1_w": s * jax.random.normal(ks[0], (32, 3, 3, 3), jnp.float32),
        "conv1_b": s * jax.random.normal(ks[1], (32,), jnp.float32),
        "conv2_w": s * jax.random.normal(ks[2], (64, 32, 3, 3), jnp.float32),
        "conv2_b": s * jax.random.normal(ks[3], (64,), jnp.float32),
        "fc1_w":   s * jax.random.normal(ks[4], (128, 9216), jnp.float32),
        "fc1_b":   s * jax.random.normal(ks[5], (128,), jnp.float32),
        "fc2_w":   s * jax.random.normal(ks[6], (10, 128), jnp.float32),
        "fc2_b":   s * jax.random.normal(ks[7], (10,), jnp.float32),
    }


def prepare_params(p):
    """One-time conversion from PyTorch layouts to kernel-friendly layouts."""
    # conv weights OIHW -> tap-major [kh*kw, cin, cout]
    conv1_w = jnp.transpose(p["conv1_w"], (2, 3, 1, 0)).reshape(9, 3, 32)
    conv2_w = jnp.transpose(p["conv2_w"], (2, 3, 1, 0)).reshape(9, 32, 64)
    # fc1: permute the 9216 input features from PyTorch NCHW flatten order
    # (c, h, w) to our NHWC flatten order (h, w, c), then pre-transpose to
    # [9216, 128] so the forward pass does no weight transposes at all.
    fc1_w = (p["fc1_w"].reshape(128, 64, 12, 12)
             .transpose(0, 2, 3, 1).reshape(128, 9216).T)
    return {
        "conv1_w": conv1_w.astype(jnp.bfloat16),
        "conv1_b": p["conv1_b"].reshape(1, 32).astype(jnp.float32),
        "conv2_w": conv2_w.astype(jnp.bfloat16),
        "conv2_b": p["conv2_b"].reshape(1, 64).astype(jnp.float32),
        "fc1_w":   fc1_w.astype(jnp.bfloat16),
        "fc1_b":   p["fc1_b"].reshape(1, 128).astype(jnp.float32),
        "fc2_w":   p["fc2_w"].T.astype(jnp.bfloat16),
        "fc2_b":   p["fc2_b"].reshape(1, 10).astype(jnp.float32),
    }


def net_forward(x_nchw, kp):
    B = x_nchw.shape[0]
    # NCHW -> NHWC; matmul inputs in bf16, accumulation stays f32 in-kernel.
    x = jnp.transpose(x_nchw, (0, 2, 3, 1)).astype(jnp.bfloat16)
    pooled = conv_block(x, kp["conv1_w"], kp["conv1_b"],
                        kp["conv2_w"], kp["conv2_b"])        # [B, 12, 12, 64]
    # dropout1 / dropout2 are identity at inference.
    # TODO(synk): training-mode dropout (p=0.25 / p=0.5) not implemented.
    flat = pooled.reshape(B, 12 * 12 * 64)   # contiguous reshape (NHWC order,
                                             # matched by the permuted fc1 weight)
    return fc_tail(flat, kp["fc1_w"], kp["fc1_b"], kp["fc2_w"], kp["fc2_b"])


if __name__ == "__main__":
    key = jax.random.PRNGKey(0)
    k_x, k_p = jax.random.split(key)
    # fc1 expects 9216 = 64 * 12 * 12 features -> input spatial must be 28x28.
    x = jax.random.normal(k_x, (2, 3, 28, 28), jnp.float32)   # NCHW, batch=2
    params = prepare_params(init_params(k_p))

    fwd = jax.jit(net_forward)
    out = jax.block_until_ready(fwd(x, params))

    assert out.shape == (2, 10)
    assert out.dtype == jnp.float32
    # sanity: rows of log_softmax exponentiate-sum to ~1
    assert bool(jnp.all(jnp.abs(jnp.sum(jnp.exp(out), axis=1) - 1.0) < 1e-3))
    print("KERNEL_OK")
</pallas_src>

<mosaic_0001>
module attributes {stable_mosaic.version = 11 : i64} {
  func.func @_conv_block_kernel(%arg0: i32, %arg1: memref<1x28x28x3xbf16, #tpu.memory_space<vmem>>, %arg2: memref<9x3x32xbf16, #tpu.memory_space<vmem>>, %arg3: memref<1x32xf32, #tpu.memory_space<vmem>>, %arg4: memref<9x32x64xbf16, #tpu.memory_space<vmem>>, %arg5: memref<1x64xf32, #tpu.memory_space<vmem>>, %arg6: memref<1x12x12x64xbf16, #tpu.memory_space<vmem>>, %arg7: memref<26x26x32xbf16, #tpu.memory_space<vmem>>, %arg8: memref<24x24x64xf32, #tpu.memory_space<vmem>>) attributes {dimension_semantics = [#tpu.dimension_semantics<parallel>], iteration_bounds = array<i64: 2>, scalar_prefetch = 0 : i64, scratch_operands = 2 : i64, tpu.core_type = #tpu.core_type<tc>, window_params = [{transform_indices = @transform_0, window_bounds = array<i64: 1, 28, 28, 3>}, {pipeline_mode = #tpu.pipeline_mode<synchronous>, transform_indices = @transform_1, window_bounds = array<i64: 9, 3, 32>}, {pipeline_mode = #tpu.pipeline_mode<synchronous>, transform_indices = @transform_2, window_bounds = array<i64: 1, 32>}, {pipeline_mode = #tpu.pipeline_mode<synchronous>, transform_indices = @transform_3, window_bounds = array<i64: 9, 32, 64>}, {pipeline_mode = #tpu.pipeline_mode<synchronous>, transform_indices = @transform_4, window_bounds = array<i64: 1, 64>}, {transform_indices = @transform_5, window_bounds = array<i64: 1, 12, 12, 64>}]} {
    %c0_i32 = arith.constant 0 : i32
    %c26_i32 = arith.constant 26 : i32
    %0 = arith.addi %c0_i32, %c26_i32 : i32
    %c1_i32 = arith.constant 1 : i32
    scf.for %arg9 = %c0_i32 to %0 step %c1_i32  : i32 {
      %cst = arith.constant 0.000000e+00 : f32
      %3 = vector.broadcast %cst : f32 to vector<26x32xf32>
      %c0_i32_7 = arith.constant 0 : i32
      %4 = arith.addi %arg9, %c0_i32_7 : i32
      %c0 = arith.constant 0 : index
      %5 = arith.index_cast %4 : i32 to index
      %c0_8 = arith.constant 0 : index
      %c0_9 = arith.constant 0 : index
      %6 = vector.load %arg1[%c0, %5, %c0_8, %c0_9] : memref<1x28x28x3xbf16, #tpu.memory_space<vmem>>, vector<1x1x26x3xbf16>
      %7 = vector.shape_cast %6 : vector<1x1x26x3xbf16> to vector<26x3xbf16>
      %c0_10 = arith.constant 0 : index
      %c0_11 = arith.constant 0 : index
      %c0_12 = arith.constant 0 : index
      %8 = vector.load %arg2[%c0_10, %c0_11, %c0_12] : memref<9x3x32xbf16, #tpu.memory_space<vmem>>, vector<1x3x32xbf16>
      %9 = vector.shape_cast %8 : vector<1x3x32xbf16> to vector<3x32xbf16>
      %cst_13 = arith.constant dense<0.000000e+00> : vector<26x32xf32>
      %10 = tpu.matmul %7, %9, %cst_13 {dimension_numbers = #tpu.dot_dimension_numbers<[1], [0], [0], [1], [0, 0, 1, 1], [], []>} : vector<26x3xbf16>, vector<3x32xbf16>, vector<26x32xf32> -> vector<26x32xf32>
      %11 = arith.addf %3, %10 : vector<26x32xf32>
      %c0_i32_14 = arith.constant 0 : i32
      %12 = arith.addi %arg9, %c0_i32_14 : i32
      %c0_15 = arith.constant 0 : index
      %13 = arith.index_cast %12 : i32 to index
      %c1 = arith.constant 1 : index
      %c0_16 = arith.constant 0 : index
      %14 = vector.load %arg1[%c0_15, %13, %c1, %c0_16] : memref<1x28x28x3xbf16, #tpu.memory_space<vmem>>, vector<1x1x26x3xbf16>
      %15 = vector.shape_cast %14 : vector<1x1x26x3xbf16> to vector<26x3xbf16>
      %c1_17 = arith.constant 1 : index
      %c0_18 = arith.constant 0 : index
      %c0_19 = arith.constant 0 : index
      %16 = vector.load %arg2[%c1_17, %c0_18, %c0_19] : memref<9x3x32xbf16, #tpu.memory_space<vmem>>, vector<1x3x32xbf16>
      %17 = vector.shape_cast %16 : vector<1x3x32xbf16> to vector<3x32xbf16>
      %cst_20 = arith.constant dense<0.000000e+00> : vector<26x32xf32>
      %18 = tpu.matmul %15, %17, %cst_20 {dimension_numbers = #tpu.dot_dimension_numbers<[1], [0], [0], [1], [0, 0, 1, 1], [], []>} : vector<26x3xbf16>, vector<3x32xbf16>, vector<26x32xf32> -> vector<26x32xf32>
      %19 = arith.addf %11, %18 : vector<26x32xf32>
      %c0_i32_21 = arith.constant 0 : i32
      %20 = arith.addi %arg9, %c0_i32_21 : i32
      %c0_22 = arith.constant 0 : index
      %21 = arith.index_cast %20 : i32 to index
      %c2 = arith.constant 2 : index
      %c0_23 = arith.constant 0 : index
      %22 = vector.load %arg1[%c0_22, %21, %c2, %c0_23] : memref<1x28x28x3xbf16, #tpu.memory_space<vmem>>, vector<1x1x26x3xbf16>
      %23 = vector.shape_cast %22 : vector<1x1x26x3xbf16> to vector<26x3xbf16>
      %c2_24 = arith.constant 2 : index
      %c0_25 = arith.constant 0 : index
      %c0_26 = arith.constant 0 : index
      %24 = vector.load %arg2[%c2_24, %c0_25, %c0_26] : memref<9x3x32xbf16, #tpu.memory_space<vmem>>, vector<1x3x32xbf16>
      %25 = vector.shape_cast %24 : vector<1x3x32xbf16> to vector<3x32xbf16>
      %cst_27 = arith.constant dense<0.000000e+00> : vector<26x32xf32>
      %26 = tpu.matmul %23, %25, %cst_27 {dimension_numbers = #tpu.dot_dimension_numbers<[1], [0], [0], [1], [0, 0, 1, 1], [], []>} : vector<26x3xbf16>, vector<3x32xbf16>, vector<26x32xf32> -> vector<26x32xf32>
      %27 = arith.addf %19, %26 : vector<26x32xf32>
      %c1_i32_28 = arith.constant 1 : i32
      %28 = arith.addi %arg9, %c1_i32_28 : i32
      %c0_29 = arith.constant 0 : index
      %29 = arith.index_cast %28 : i32 to index
      %c0_30 = arith.constant 0 : index
      %c0_31 = arith.constant 0 : index
      %30 = vector.load %arg1[%c0_29, %29, %c0_30, %c0_31] : memref<1x28x28x3xbf16, #tpu.memory_space<vmem>>, vector<1x1x26x3xbf16>
      %31 = vector.shape_cast %30 : vector<1x1x26x3xbf16> to vector<26x3xbf16>
      %c3 = arith.constant 3 : index
      %c0_32 = arith.constant 0 : index
      %c0_33 = arith.constant 0 : index
      %32 = vector.load %arg2[%c3, %c0_32, %c0_33] : memref<9x3x32xbf16, #tpu.memory_space<vmem>>, vector<1x3x32xbf16>
      %33 = vector.shape_cast %32 : vector<1x3x32xbf16> to vector<3x32xbf16>
      %cst_34 = arith.constant dense<0.000000e+00> : vector<26x32xf32>
      %34 = tpu.matmul %31, %33, %cst_34 {dimension_numbers = #tpu.dot_dimension_numbers<[1], [0], [0], [1], [0, 0, 1, 1], [], []>} : vector<26x3xbf16>, vector<3x32xbf16>, vector<26x32xf32> -> vector<26x32xf32>
      %35 = arith.addf %27, %34 : vector<26x32xf32>
      %c1_i32_35 = arith.constant 1 : i32
      %36 = arith.addi %arg9, %c1_i32_35 : i32
      %c0_36 = arith.constant 0 : index
      %37 = arith.index_cast %36 : i32 to index
      %c1_37 = arith.constant 1 : index
      %c0_38 = arith.constant 0 : index
      %38 = vector.load %arg1[%c0_36, %37, %c1_37, %c0_38] : memref<1x28x28x3xbf16, #tpu.memory_space<vmem>>, vector<1x1x26x3xbf16>
      %39 = vector.shape_cast %38 : vector<1x1x26x3xbf16> to vector<26x3xbf16>
      %c4 = arith.constant 4 : index
      %c0_39 = arith.constant 0 : index
      %c0_40 = arith.constant 0 : index
      %40 = vector.load %arg2[%c4, %c0_39, %c0_40] : memref<9x3x32xbf16, #tpu.memory_space<vmem>>, vector<1x3x32xbf16>
      %41 = vector.shape_cast %40 : vector<1x3x32xbf16> to vector<3x32xbf16>
      %cst_41 = arith.constant dense<0.000000e+00> : vector<26x32xf32>
      %42 = tpu.matmul %39, %41, %cst_41 {dimension_numbers = #tpu.dot_dimension_numbers<[1], [0], [0], [1], [0, 0, 1, 1], [], []>} : vector<26x3xbf16>, vector<3x32xbf16>, vector<26x32xf32> -> vector<26x32xf32>
      %43 = arith.addf %35, %42 : vector<26x32xf32>
      %c1_i32_42 = arith.constant 1 : i32
      %44 = arith.addi %arg9, %c1_i32_42 : i32
      %c0_43 = arith.constant 0 : index
      %45 = arith.index_cast %44 : i32 to index
      %c2_44 = arith.constant 2 : index
      %c0_45 = arith.constant 0 : index
      %46 = vector.load %arg1[%c0_43, %45, %c2_44, %c0_45] : memref<1x28x28x3xbf16, #tpu.memory_space<vmem>>, vector<1x1x26x3xbf16>
      %47 = vector.shape_cast %46 : vector<1x1x26x3xbf16> to vector<26x3xbf16>
      %c5 = arith.constant 5 : index
      %c0_46 = arith.constant 0 : index
      %c0_47 = arith.constant 0 : index
      %48 = vector.load %arg2[%c5, %c0_46, %c0_47] : memref<9x3x32xbf16, #tpu.memory_space<vmem>>, vector<1x3x32xbf16>
      %49 = vector.shape_cast %48 : vector<1x3x32xbf16> to vector<3x32xbf16>
      %cst_48 = arith.constant dense<0.000000e+00> : vector<26x32xf32>
      %50 = tpu.matmul %47, %49, %cst_48 {dimension_numbers = #tpu.dot_dimension_numbers<[1], [0], [0], [1], [0, 0, 1, 1], [], []>} : vector<26x3xbf16>, vector<3x32xbf16>, vector<26x32xf32> -> vector<26x32xf32>
      %51 = arith.addf %43, %50 : vector<26x32xf32>
      %c2_i32 = arith.constant 2 : i32
      %52 = arith.addi %arg9, %c2_i32 : i32
      %c0_49 = arith.constant 0 : index
      %53 = arith.index_cast %52 : i32 to index
      %c0_50 = arith.constant 0 : index
      %c0_51 = arith.constant 0 : index
      %54 = vector.load %arg1[%c0_49, %53, %c0_50, %c0_51] : memref<1x28x28x3xbf16, #tpu.memory_space<vmem>>, vector<1x1x26x3xbf16>
      %55 = vector.shape_cast %54 : vector<1x1x26x3xbf16> to vector<26x3xbf16>
      %c6 = arith.constant 6 : index
      %c0_52 = arith.constant 0 : index
      %c0_53 = arith.constant 0 : index
      %56 = vector.load %arg2[%c6, %c0_52, %c0_53] : memref<9x3x32xbf16, #tpu.memory_space<vmem>>, vector<1x3x32xbf16>
      %57 = vector.shape_cast %56 : vector<1x3x32xbf16> to vector<3x32xbf16>
      %cst_54 = arith.constant dense<0.000000e+00> : vector<26x32xf32>
      %58 = tpu.matmul %55, %57, %cst_54 {dimension_numbers = #tpu.dot_dimension_numbers<[1], [0], [0], [1], [0, 0, 1, 1], [], []>} : vector<26x3xbf16>, vector<3x32xbf16>, vector<26x32xf32> -> vector<26x32xf32>
      %59 = arith.addf %51, %58 : vector<26x32xf32>
      %c2_i32_55 = arith.constant 2 : i32
      %60 = arith.addi %arg9, %c2_i32_55 : i32
      %c0_56 = arith.constant 0 : index
      %61 = arith.index_cast %60 : i32 to index
      %c1_57 = arith.constant 1 : index
      %c0_58 = arith.constant 0 : index
      %62 = vector.load %arg1[%c0_56, %61, %c1_57, %c0_58] : memref<1x28x28x3xbf16, #tpu.memory_space<vmem>>, vector<1x1x26x3xbf16>
      %63 = vector.shape_cast %62 : vector<1x1x26x3xbf16> to vector<26x3xbf16>
      %c7 = arith.constant 7 : index
      %c0_59 = arith.constant 0 : index
      %c0_60 = arith.constant 0 : index
      %64 = vector.load %arg2[%c7, %c0_59, %c0_60] : memref<9x3x32xbf16, #tpu.memory_space<vmem>>, vector<1x3x32xbf16>
      %65 = vector.shape_cast %64 : vector<1x3x32xbf16> to vector<3x32xbf16>
      %cst_61 = arith.constant dense<0.000000e+00> : vector<26x32xf32>
      %66 = tpu.matmul %63, %65, %cst_61 {dimension_numbers = #tpu.dot_dimension_numbers<[1], [0], [0], [1], [0, 0, 1, 1], [], []>} : vector<26x3xbf16>, vector<3x32xbf16>, vector<26x32xf32> -> vector<26x32xf32>
      %67 = arith.addf %59, %66 : vector<26x32xf32>
      %c2_i32_62 = arith.constant 2 : i32
      %68 = arith.addi %arg9, %c2_i32_62 : i32
      %c0_63 = arith.constant 0 : index
      %69 = arith.index_cast %68 : i32 to index
      %c2_64 = arith.constant 2 : index
      %c0_65 = arith.constant 0 : index
      %70 = vector.load %arg1[%c0_63, %69, %c2_64, %c0_65] : memref<1x28x28x3xbf16, #tpu.memory_space<vmem>>, vector<1x1x26x3xbf16>
      %71 = vector.shape_cast %70 : vector<1x1x26x3xbf16> to vector<26x3xbf16>
      %c8 = arith.constant 8 : index
      %c0_66 = arith.constant 0 : index
      %c0_67 = arith.constant 0 : index
      %72 = vector.load %arg2[%c8, %c0_66, %c0_67] : memref<9x3x32xbf16, #tpu.memory_space<vmem>>, vector<1x3x32xbf16>
      %73 = vector.shape_cast %72 : vector<1x3x32xbf16> to vector<3x32xbf16>
      %cst_68 = arith.constant dense<0.000000e+00> : vector<26x32xf32>
      %74 = tpu.matmul %71, %73, %cst_68 {dimension_numbers = #tpu.dot_dimension_numbers<[1], [0], [0], [1], [0, 0, 1, 1], [], []>} : vector<26x3xbf16>, vector<3x32xbf16>, vector<26x32xf32> -> vector<26x32xf32>
      %75 = arith.addf %67, %74 : vector<26x32xf32>
      %c0_69 = arith.constant 0 : index
      %c0_70 = arith.constant 0 : index
      %76 = vector.load %arg3[%c0_69, %c0_70] : memref<1x32xf32, #tpu.memory_space<vmem>>, vector<1x32xf32>
      %77 = vector.broadcast %76 : vector<1x32xf32> to vector<26x32xf32>
      %78 = arith.addf %75, %77 : vector<26x32xf32>
      %cst_71 = arith.constant 0.000000e+00 : f32
      %79 = vector.broadcast %cst_71 : f32 to vector<26x32xf32>
      %80 = arith.maximumf %78, %79 : vector<26x32xf32>
      %81 = arith.truncf %80 : vector<26x32xf32> to vector<26x32xbf16>
      %82 = arith.index_cast %arg9 : i32 to index
      %c0_72 = arith.constant 0 : index
      %c0_73 = arith.constant 0 : index
      %83 = vector.load %arg7[%82, %c0_72, %c0_73] : memref<26x26x32xbf16, #tpu.memory_space<vmem>>, vector<1x26x32xbf16>
      %84 = vector.shape_cast %83 : vector<1x26x32xbf16> to vector<26x32xbf16>
      %85 = vector.shape_cast %81 : vector<26x32xbf16> to vector<1x26x32xbf16>
      tpu.vector_store %arg7[%82, %c0_72, %c0_73], %85 {strides = array<i32>} : memref<26x26x32xbf16, #tpu.memory_space<vmem>>, vector<1x26x32xbf16>,
    }
    %c26_i32_0 = arith.constant 26 : i32
    %c0_i32_1 = arith.constant 0 : i32
    %c24_i32 = arith.constant 24 : i32
    %1 = arith.addi %c0_i32_1, %c24_i32 : i32
    %c1_i32_2 = arith.constant 1 : i32
    scf.for %arg9 = %c0_i32_1 to %1 step %c1_i32_2  : i32 {
      %cst = arith.constant 0.000000e+00 : f32
      %3 = vector.broadcast %cst : f32 to vector<24x64xf32>
      %c0_i32_7 = arith.constant 0 : i32
      %4 = arith.addi %arg9, %c0_i32_7 : i32
      %5 = arith.index_cast %4 : i32 to index
      %c0 = arith.constant 0 : index
      %c0_8 = arith.constant 0 : index
      %6 = vector.load %arg7[%5, %c0, %c0_8] : memref<26x26x32xbf16, #tpu.memory_space<vmem>>, vector<1x24x32xbf16>
      %7 = vector.shape_cast %6 : vector<1x24x32xbf16> to vector<24x32xbf16>
      %c0_9 = arith.constant 0 : index
      %c0_10 = arith.constant 0 : index
      %c0_11 = arith.constant 0 : index
      %8 = vector.load %arg4[%c0_9, %c0_10, %c0_11] : memref<9x32x64xbf16, #tpu.memory_space<vmem>>, vector<1x32x64xbf16>
      %9 = vector.shape_cast %8 : vector<1x32x64xbf16> to vector<32x64xbf16>
      %cst_12 = arith.constant dense<0.000000e+00> : vector<24x64xf32>
      %10 = tpu.matmul %7, %9, %cst_12 {dimension_numbers = #tpu.dot_dimension_numbers<[1], [0], [0], [1], [0, 0, 1, 1], [], []>} : vector<24x32xbf16>, vector<32x64xbf16>, vector<24x64xf32> -> vector<24x64xf32>
      %11 = arith.addf %3, %10 : vector<24x64xf32>
      %c0_i32_13 = arith.constant 0 : i32
      %12 = arith.addi %arg9, %c0_i32_13 : i32
      %13 = arith.index_cast %12 : i32 to index
      %c1 = arith.constant 1 : index
      %c0_14 = arith.constant 0 : index
      %14 = vector.load %arg7[%13, %c1, %c0_14] : memref<26x26x32xbf16, #tpu.memory_space<vmem>>, vector<1x24x32xbf16>
      %15 = vector.shape_cast %14 : vector<1x24x32xbf16> to vector<24x32xbf16>
      %c1_15 = arith.constant 1 : index
      %c0_16 = arith.constant 0 : index
      %c0_17 = arith.constant 0 : index
      %16 = vector.load %arg4[%c1_15, %c0_16, %c0_17] : memref<9x32x64xbf16, #tpu.memory_space<vmem>>, vector<1x32x64xbf16>
      %17 = vector.shape_cast %16 : vector<1x32x64xbf16> to vector<32x64xbf16>
      %cst_18 = arith.constant dense<0.000000e+00> : vector<24x64xf32>
      %18 = tpu.matmul %15, %17, %cst_18 {dimension_numbers = #tpu.dot_dimension_numbers<[1], [0], [0], [1], [0, 0, 1, 1], [], []>} : vector<24x32xbf16>, vector<32x64xbf16>, vector<24x64xf32> -> vector<24x64xf32>
      %19 = arith.addf %11, %18 : vector<24x64xf32>
      %c0_i32_19 = arith.constant 0 : i32
      %20 = arith.addi %arg9, %c0_i32_19 : i32
      %21 = arith.index_cast %20 : i32 to index
      %c2 = arith.constant 2 : index
      %c0_20 = arith.constant 0 : index
      %22 = vector.load %arg7[%21, %c2, %c0_20] : memref<26x26x32xbf16, #tpu.memory_space<vmem>>, vector<1x24x32xbf16>
      %23 = vector.shape_cast %22 : vector<1x24x32xbf16> to vector<24x32xbf16>
      %c2_21 = arith.constant 2 : index
      %c0_22 = arith.constant 0 : index
      %c0_23 = arith.constant 0 : index
      %24 = vector.load %arg4[%c2_21, %c0_22, %c0_23] : memref<9x32x64xbf16, #tpu.memory_space<vmem>>, vector<1x32x64xbf16>
      %25 = vector.shape_cast %24 : vector<1x32x64xbf16> to vector<32x64xbf16>
      %cst_24 = arith.constant dense<0.000000e+00> : vector<24x64xf32>
      %26 = tpu.matmul %23, %25, %cst_24 {dimension_numbers = #tpu.dot_dimension_numbers<[1], [0], [0], [1], [0, 0, 1, 1], [], []>} : vector<24x32xbf16>, vector<32x64xbf16>, vector<24x64xf32> -> vector<24x64xf32>
      %27 = arith.addf %19, %26 : vector<24x64xf32>
      %c1_i32_25 = arith.constant 1 : i32
      %28 = arith.addi %arg9, %c1_i32_25 : i32
      %29 = arith.index_cast %28 : i32 to index
      %c0_26 = arith.constant 0 : index
      %c0_27 = arith.constant 0 : index
      %30 = vector.load %arg7[%29, %c0_26, %c0_27] : memref<26x26x32xbf16, #tpu.memory_space<vmem>>, vector<1x24x32xbf16>
      %31 = vector.shape_cast %30 : vector<1x24x32xbf16> to vector<24x32xbf16>
      %c3 = arith.constant 3 : index
      %c0_28 = arith.constant 0 : index
      %c0_29 = arith.constant 0 : index
      %32 = vector.load %arg4[%c3, %c0_28, %c0_29] : memref<9x32x64xbf16, #tpu.memory_space<vmem>>, vector<1x32x64xbf16>
      %33 = vector.shape_cast %32 : vector<1x32x64xbf16> to vector<32x64xbf16>
      %cst_30 = arith.constant dense<0.000000e+00> : vector<24x64xf32>
      %34 = tpu.matmul %31, %33, %cst_30 {dimension_numbers = #tpu.dot_dimension_numbers<[1], [0], [0], [1], [0, 0, 1, 1], [], []>} : vector<24x32xbf16>, vector<32x64xbf16>, vector<24x64xf32> -> vector<24x64xf32>
      %35 = arith.addf %27, %34 : vector<24x64xf32>
      %c1_i32_31 = arith.constant 1 : i32
      %36 = arith.addi %arg9, %c1_i32_31 : i32
      %37 = arith.index_cast %36 : i32 to index
      %c1_32 = arith.constant 1 : index
      %c0_33 = arith.constant 0 : index
      %38 = vector.load %arg7[%37, %c1_32, %c0_33] : memref<26x26x32xbf16, #tpu.memory_space<vmem>>, vector<1x24x32xbf16>
      %39 = vector.shape_cast %38 : vector<1x24x32xbf16> to vector<24x32xbf16>
      %c4 = arith.constant 4 : index
      %c0_34 = arith.constant 0 : index
      %c0_35 = arith.constant 0 : index
      %40 = vector.load %arg4[%c4, %c0_34, %c0_35] : memref<9x32x64xbf16, #tpu.memory_space<vmem>>, vector<1x32x64xbf16>
      %41 = vector.shape_cast %40 : vector<1x32x64xbf16> to vector<32x64xbf16>
      %cst_36 = arith.constant dense<0.000000e+00> : vector<24x64xf32>
      %42 = tpu.matmul %39, %41, %cst_36 {dimension_numbers = #tpu.dot_dimension_numbers<[1], [0], [0], [1], [0, 0, 1, 1], [], []>} : vector<24x32xbf16>, vector<32x64xbf16>, vector<24x64xf32> -> vector<24x64xf32>
      %43 = arith.addf %35, %42 : vector<24x64xf32>
      %c1_i32_37 = arith.constant 1 : i32
      %44 = arith.addi %arg9, %c1_i32_37 : i32
      %45 = arith.index_cast %44 : i32 to index
      %c2_38 = arith.constant 2 : index
      %c0_39 = arith.constant 0 : index
      %46 = vector.load %arg7[%45, %c2_38, %c0_39] : memref<26x26x32xbf16, #tpu.memory_space<vmem>>, vector<1x24x32xbf16>
      %47 = vector.shape_cast %46 : vector<1x24x32xbf16> to vector<24x32xbf16>
      %c5 = arith.constant 5 : index
      %c0_40 = arith.constant 0 : index
      %c0_41 = arith.constant 0 : index
      %48 = vector.load %arg4[%c5, %c0_40, %c0_41] : memref<9x32x64xbf16, #tpu.memory_space<vmem>>, vector<1x32x64xbf16>
      %49 = vector.shape_cast %48 : vector<1x32x64xbf16> to vector<32x64xbf16>
      %cst_42 = arith.constant dense<0.000000e+00> : vector<24x64xf32>
      %50 = tpu.matmul %47, %49, %cst_42 {dimension_numbers = #tpu.dot_dimension_numbers<[1], [0], [0], [1], [0, 0, 1, 1], [], []>} : vector<24x32xbf16>, vector<32x64xbf16>, vector<24x64xf32> -> vector<24x64xf32>
      %51 = arith.addf %43, %50 : vector<24x64xf32>
      %c2_i32 = arith.constant 2 : i32
      %52 = arith.addi %arg9, %c2_i32 : i32
      %53 = arith.index_cast %52 : i32 to index
      %c0_43 = arith.constant 0 : index
      %c0_44 = arith.constant 0 : index
      %54 = vector.load %arg7[%53, %c0_43, %c0_44] : memref<26x26x32xbf16, #tpu.memory_space<vmem>>, vector<1x24x32xbf16>
      %55 = vector.shape_cast %54 : vector<1x24x32xbf16> to vector<24x32xbf16>
      %c6 = arith.constant 6 : index
      %c0_45 = arith.constant 0 : index
      %c0_46 = arith.constant 0 : index
      %56 = vector.load %arg4[%c6, %c0_45, %c0_46] : memref<9x32x64xbf16, #tpu.memory_space<vmem>>, vector<1x32x64xbf16>
      %57 = vector.shape_cast %56 : vector<1x32x64xbf16> to vector<32x64xbf16>
      %cst_47 = arith.constant dense<0.000000e+00> : vector<24x64xf32>
      %58 = tpu.matmul %55, %57, %cst_47 {dimension_numbers = #tpu.dot_dimension_numbers<[1], [0], [0], [1], [0, 0, 1, 1], [], []>} : vector<24x32xbf16>, vector<32x64xbf16>, vector<24x64xf32> -> vector<24x64xf32>
      %59 = arith.addf %51, %58 : vector<24x64xf32>
      %c2_i32_48 = arith.constant 2 : i32
      %60 = arith.addi %arg9, %c2_i32_48 : i32
      %61 = arith.index_cast %60 : i32 to index
      %c1_49 = arith.constant 1 : index
      %c0_50 = arith.constant 0 : index
      %62 = vector.load %arg7[%61, %c1_49, %c0_50] : memref<26x26x32xbf16, #tpu.memory_space<vmem>>, vector<1x24x32xbf16>
      %63 = vector.shape_cast %62 : vector<1x24x32xbf16> to vector<24x32xbf16>
      %c7 = arith.constant 7 : index
      %c0_51 = arith.constant 0 : index
      %c0_52 = arith.constant 0 : index
      %64 = vector.load %arg4[%c7, %c0_51, %c0_52] : memref<9x32x64xbf16, #tpu.memory_space<vmem>>, vector<1x32x64xbf16>
      %65 = vector.shape_cast %64 : vector<1x32x64xbf16> to vector<32x64xbf16>
      %cst_53 = arith.constant dense<0.000000e+00> : vector<24x64xf32>
      %66 = tpu.matmul %63, %65, %cst_53 {dimension_numbers = #tpu.dot_dimension_numbers<[1], [0], [0], [1], [0, 0, 1, 1], [], []>} : vector<24x32xbf16>, vector<32x64xbf16>, vector<24x64xf32> -> vector<24x64xf32>
      %67 = arith.addf %59, %66 : vector<24x64xf32>
      %c2_i32_54 = arith.constant 2 : i32
      %68 = arith.addi %arg9, %c2_i32_54 : i32
      %69 = arith.index_cast %68 : i32 to index
      %c2_55 = arith.constant 2 : index
      %c0_56 = arith.constant 0 : index
      %70 = vector.load %arg7[%69, %c2_55, %c0_56] : memref<26x26x32xbf16, #tpu.memory_space<vmem>>, vector<1x24x32xbf16>
      %71 = vector.shape_cast %70 : vector<1x24x32xbf16> to vector<24x32xbf16>
      %c8 = arith.constant 8 : index
      %c0_57 = arith.constant 0 : index
      %c0_58 = arith.constant 0 : index
      %72 = vector.load %arg4[%c8, %c0_57, %c0_58] : memref<9x32x64xbf16, #tpu.memory_space<vmem>>, vector<1x32x64xbf16>
      %73 = vector.shape_cast %72 : vector<1x32x64xbf16> to vector<32x64xbf16>
      %cst_59 = arith.constant dense<0.000000e+00> : vector<24x64xf32>
      %74 = tpu.matmul %71, %73, %cst_59 {dimension_numbers = #tpu.dot_dimension_numbers<[1], [0], [0], [1], [0, 0, 1, 1], [], []>} : vector<24x32xbf16>, vector<32x64xbf16>, vector<24x64xf32> -> vector<24x64xf32>
      %75 = arith.addf %67, %74 : vector<24x64xf32>
      %c0_60 = arith.constant 0 : index
      %c0_61 = arith.constant 0 : index
      %76 = vector.load %arg5[%c0_60, %c0_61] : memref<1x64xf32, #tpu.memory_space<vmem>>, vector<1x64xf32>
      %77 = vector.broadcast %76 : vector<1x64xf32> to vector<24x64xf32>
      %78 = arith.addf %75, %77 : vector<24x64xf32>
      %cst_62 = arith.constant 0.000000e+00 : f32
      %79 = vector.broadcast %cst_62 : f32 to vector<24x64xf32>
      %80 = arith.maximumf %78, %79 : vector<24x64xf32>
      %81 = arith.index_cast %arg9 : i32 to index
      %c0_63 = arith.constant 0 : index
      %c0_64 = arith.constant 0 : index
      %82 = vector.load %arg8[%81, %c0_63, %c0_64] : memref<24x24x64xf32, #tpu.memory_space<vmem>>, vector<1x24x64xf32>
      %83 = vector.shape_cast %82 : vector<1x24x64xf32> to vector<24x64xf32>
      %84 = vector.shape_cast %80 : vector<24x64xf32> to vector<1x24x64xf32>
      tpu.vector_store %arg8[%81, %c0_63, %c0_64], %84 {strides = array<i32>} : memref<24x24x64xf32, #tpu.memory_space<vmem>>, vector<1x24x64xf32>,
    }
    %c24_i32_3 = arith.constant 24 : i32
    %c0_i32_4 = arith.constant 0 : i32
    %c12_i32 = arith.constant 12 : i32
    %2 = arith.addi %c0_i32_4, %c12_i32 : i32
    %c1_i32_5 = arith.constant 1 : i32
    scf.for %arg9 = %c0_i32_4 to %2 step %c1_i32_5  : i32 {
      %c2_i32 = arith.constant 2 : i32
      %3 = arith.muli %c2_i32, %arg9 : i32
      %4 = arith.index_cast %3 : i32 to index
      %c0 = arith.constant 0 : index
      %c0_7 = arith.constant 0 : index
      %5 = tpu.strided_load %arg8[%4, %c0, %c0_7] {strides = array<i32: 1, 2, 1>} : memref<24x24x64xf32, #tpu.memory_space<vmem>>, vector<1x12x64xf32>
      %6 = vector.shape_cast %5 : vector<1x12x64xf32> to vector<12x64xf32>
      %c2_i32_8 = arith.constant 2 : i32
      %7 = arith.muli %c2_i32_8, %arg9 : i32
      %8 = arith.index_cast %7 : i32 to index
      %c1 = arith.constant 1 : index
      %c0_9 = arith.constant 0 : index
      %9 = tpu.strided_load %arg8[%8, %c1, %c0_9] {strides = array<i32: 1, 2, 1>} : memref<24x24x64xf32, #tpu.memory_space<vmem>>, vector<1x12x64xf32>
      %10 = vector.shape_cast %9 : vector<1x12x64xf32> to vector<12x64xf32>
      %c2_i32_10 = arith.constant 2 : i32
      %11 = arith.muli %c2_i32_10, %arg9 : i32
      %c1_i32_11 = arith.constant 1 : i32
      %12 = arith.addi %11, %c1_i32_11 : i32
      %13 = arith.index_cast %12 : i32 to index
      %c0_12 = arith.constant 0 : index
      %c0_13 = arith.constant 0 : index
      %14 = tpu.strided_load %arg8[%13, %c0_12, %c0_13] {strides = array<i32: 1, 2, 1>} : memref<24x24x64xf32, #tpu.memory_space<vmem>>, vector<1x12x64xf32>
      %15 = vector.shape_cast %14 : vector<1x12x64xf32> to vector<12x64xf32>
      %c2_i32_14 = arith.constant 2 : i32
      %16 = arith.muli %c2_i32_14, %arg9 : i32
      %c1_i32_15 = arith.constant 1 : i32
      %17 = arith.addi %16, %c1_i32_15 : i32
      %18 = arith.index_cast %17 : i32 to index
      %c1_16 = arith.constant 1 : index
      %c0_17 = arith.constant 0 : index
      %19 = tpu.strided_load %arg8[%18, %c1_16, %c0_17] {strides = array<i32: 1, 2, 1>} : memref<24x24x64xf32, #tpu.memory_space<vmem>>, vector<1x12x64xf32>
      %20 = vector.shape_cast %19 : vector<1x12x64xf32> to vector<12x64xf32>
      %21 = arith.maximumf %6, %10 : vector<12x64xf32>
      %22 = arith.maximumf %15, %20 : vector<12x64xf32>
      %23 = arith.maximumf %21, %22 : vector<12x64xf32>
      %24 = arith.truncf %23 : vector<12x64xf32> to vector<12x64xbf16>
      %c0_18 = arith.constant 0 : index
      %25 = arith.index_cast %arg9 : i32 to index
      %c0_19 = arith.constant 0 : index
      %c0_20 = arith.constant 0 : index
      %26 = vector.load %arg6[%c0_18, %25, %c0_19, %c0_20] : memref<1x12x12x64xbf16, #tpu.memory_space<vmem>>, vector<1x1x12x64xbf16>
      %27 = vector.shape_cast %26 : vector<1x1x12x64xbf16> to vector<12x64xbf16>
      %28 = vector.shape_cast %24 : vector<12x64xbf16> to vector<1x1x12x64xbf16>
      tpu.vector_store %arg6[%c0_18, %25, %c0_19, %c0_20], %28 {strides = array<i32>} : memref<1x12x12x64xbf16, #tpu.memory_space<vmem>>, vector<1x1x12x64xbf16>,
    }
    %c12_i32_6 = arith.constant 12 : i32
    return
  }
  func.func @transform_0(%arg0: i32) -> (i32, i32, i32, i32) {
    %c0_i32 = arith.constant 0 : i32
    %c0_i32_0 = arith.constant 0 : i32
    %c0_i32_1 = arith.constant 0 : i32
    %c0_i32_2 = arith.constant 0 : i32
    return %arg0, %c0_i32, %c0_i32_0, %c0_i32_1 : i32, i32, i32, i32
  }
  func.func @transform_1(%arg0: i32) -> (i32, i32, i32) {
    %c0_i32 = arith.constant 0 : i32
    %c0_i32_0 = arith.constant 0 : i32
    %c0_i32_1 = arith.constant 0 : i32
    %c0_i32_2 = arith.constant 0 : i32
    return %c0_i32, %c0_i32_0, %c0_i32_1 : i32, i32, i32
  }
  func.func @transform_2(%arg0: i32) -> (i32, i32) {
    %c0_i32 = arith.constant 0 : i32
    %c0_i32_0 = arith.constant 0 : i32
    %c0_i32_1 = arith.constant 0 : i32
    return %c0_i32, %c0_i32_0 : i32, i32
  }
  func.func @transform_3(%arg0: i32) -> (i32, i32, i32) {
    %c0_i32 = arith.constant 0 : i32
    %c0_i32_0 = arith.constant 0 : i32
    %c0_i32_1 = arith.constant 0 : i32
    %c0_i32_2 = arith.constant 0 : i32
    return %c0_i32, %c0_i32_0, %c0_i32_1 : i32, i32, i32
  }
  func.func @transform_4(%arg0: i32) -> (i32, i32) {
    %c0_i32 = arith.constant 0 : i32
    %c0_i32_0 = arith.constant 0 : i32
    %c0_i32_1 = arith.constant 0 : i32
    return %c0_i32, %c0_i32_0 : i32, i32
  }
  func.func @transform_5(%arg0: i32) -> (i32, i32, i32, i32) {
    %c0_i32 = arith.constant 0 : i32
    %c0_i32_0 = arith.constant 0 : i32
    %c0_i32_1 = arith.constant 0 : i32
    %c0_i32_2 = arith.constant 0 : i32
    return %arg0, %c0_i32, %c0_i32_0, %c0_i32_1 : i32, i32, i32, i32
  }
}

module attributes {stable_mosaic.version = 11 : i64} {
  func.func @_fc_tail_kernel(%arg0: i32, %arg1: memref<16x2304xbf16, #tpu.memory_space<vmem>>, %arg2: memref<2304x128xbf16, #tpu.memory_space<vmem>>, %arg3: memref<1x128xf32, #tpu.memory_space<vmem>>, %arg4: memref<128x10xbf16, #tpu.memory_space<vmem>>, %arg5: memref<1x10xf32, #tpu.memory_space<vmem>>, %arg6: memref<16x10xf32, #tpu.memory_space<vmem>>, %arg7: memref<16x128xf32, #tpu.memory_space<vmem>>) attributes {dimension_semantics = [#tpu.dimension_semantics<arbitrary>], iteration_bounds = array<i64: 4>, scalar_prefetch = 0 : i64, scratch_operands = 1 : i64, tpu.core_type = #tpu.core_type<tc>, window_params = [{transform_indices = @transform_0, window_bounds = array<i64: 16, 2304>}, {transform_indices = @transform_1, window_bounds = array<i64: 2304, 128>}, {pipeline_mode = #tpu.pipeline_mode<synchronous>, transform_indices = @transform_2, window_bounds = array<i64: 1, 128>}, {pipeline_mode = #tpu.pipeline_mode<synchronous>, transform_indices = @transform_3, window_bounds = array<i64: 128, 10>}, {pipeline_mode = #tpu.pipeline_mode<synchronous>, transform_indices = @transform_4, window_bounds = array<i64: 1, 10>}, {pipeline_mode = #tpu.pipeline_mode<synchronous>, transform_indices = @transform_5, window_bounds = array<i64: 16, 10>}]} {
    %c0_i32 = arith.constant 0 : i32
    %0 = arith.cmpi eq, %arg0, %c0_i32 : i32
    %1 = arith.extui %0 : i1 to i32
    %c0_i32_0 = arith.constant 0 : i32
    %2 = arith.cmpi ne, %1, %c0_i32_0 : i32
    scf.if %2 {
      %cst_9 = arith.constant 0.000000e+00 : f32
      %12 = vector.broadcast %cst_9 : f32 to vector<16x128xf32>
      %c0_10 = arith.constant 0 : index
      %c0_11 = arith.constant 0 : index
      %13 = vector.load %arg7[%c0_10, %c0_11] : memref<16x128xf32, #tpu.memory_space<vmem>>, vector<16x128xf32>
      tpu.vector_store %arg7[%c0_10, %c0_11], %12 {strides = array<i32>} : memref<16x128xf32, #tpu.memory_space<vmem>>, vector<16x128xf32>,
    } else {
    }
    %c0 = arith.constant 0 : index
    %c0_1 = arith.constant 0 : index
    %3 = vector.load %arg7[%c0, %c0_1] : memref<16x128xf32, #tpu.memory_space<vmem>>, vector<16x128xf32>
    %c0_2 = arith.constant 0 : index
    %c0_3 = arith.constant 0 : index
    %4 = vector.load %arg1[%c0_2, %c0_3] : memref<16x2304xbf16, #tpu.memory_space<vmem>>, vector<16x2304xbf16>
    %c0_4 = arith.constant 0 : index
    %c0_5 = arith.constant 0 : index
    %5 = vector.load %arg2[%c0_4, %c0_5] : memref<2304x128xbf16, #tpu.memory_space<vmem>>, vector<2304x128xbf16>
    %cst = arith.constant dense<0.000000e+00> : vector<16x128xf32>
    %6 = tpu.matmul %4, %5, %cst {dimension_numbers = #tpu.dot_dimension_numbers<[1], [0], [0], [1], [0, 0, 1, 1], [], []>} : vector<16x2304xbf16>, vector<2304x128xbf16>, vector<16x128xf32> -> vector<16x128xf32>
    %7 = arith.addf %3, %6 : vector<16x128xf32>
    %c0_6 = arith.constant 0 : index
    %c0_7 = arith.constant 0 : index
    %8 = vector.load %arg7[%c0_6, %c0_7] : memref<16x128xf32, #tpu.memory_space<vmem>>, vector<16x128xf32>
    tpu.vector_store %arg7[%c0_6, %c0_7], %7 {strides = array<i32>} : memref<16x128xf32, #tpu.memory_space<vmem>>, vector<16x128xf32>,
    %c3_i32 = arith.constant 3 : i32
    %9 = arith.cmpi eq, %arg0, %c3_i32 : i32
    %10 = arith.extui %9 : i1 to i32
    %c0_i32_8 = arith.constant 0 : i32
    %11 = arith.cmpi ne, %10, %c0_i32_8 : i32
    scf.if %11 {
      %c0_9 = arith.constant 0 : index
      %c0_10 = arith.constant 0 : index
      %12 = vector.load %arg7[%c0_9, %c0_10] : memref<16x128xf32, #tpu.memory_space<vmem>>, vector<16x128xf32>
      %c0_11 = arith.constant 0 : index
      %c0_12 = arith.constant 0 : index
      %13 = vector.load %arg3[%c0_11, %c0_12] : memref<1x128xf32, #tpu.memory_space<vmem>>, vector<1x128xf32>
      %14 = vector.broadcast %13 : vector<1x128xf32> to vector<16x128xf32>
      %15 = arith.addf %12, %14 : vector<16x128xf32>
      %cst_13 = arith.constant 0.000000e+00 : f32
      %16 = vector.broadcast %cst_13 : f32 to vector<16x128xf32>
      %17 = arith.maximumf %15, %16 : vector<16x128xf32>
      %18 = arith.truncf %17 : vector<16x128xf32> to vector<16x128xbf16>
      %c0_14 = arith.constant 0 : index
      %c0_15 = arith.constant 0 : index
      %19 = vector.load %arg4[%c0_14, %c0_15] : memref<128x10xbf16, #tpu.memory_space<vmem>>, vector<128x10xbf16>
      %cst_16 = arith.constant dense<0.000000e+00> : vector<16x10xf32>
      %20 = tpu.matmul %18, %19, %cst_16 {dimension_numbers = #tpu.dot_dimension_numbers<[1], [0], [0], [1], [0, 0, 1, 1], [], []>} : vector<16x128xbf16>, vector<128x10xbf16>, vector<16x10xf32> -> vector<16x10xf32>
      %c0_17 = arith.constant 0 : index
      %c0_18 = arith.constant 0 : index
      %21 = vector.load %arg5[%c0_17, %c0_18] : memref<1x10xf32, #tpu.memory_space<vmem>>, vector<1x10xf32>
      %22 = vector.broadcast %21 : vector<1x10xf32> to vector<16x10xf32>
      %23 = arith.addf %20, %22 : vector<16x10xf32>
      %cst_19 = arith.constant dense<0xFF800000> : vector<16xf32>
      %24 = vector.multi_reduction <maximumf>, %23, %cst_19 [1] : vector<16x10xf32> to vector<16xf32>
      %25 = vector.shape_cast %24 : vector<16xf32> to vector<16x1xf32>
      %26 = vector.broadcast %25 : vector<16x1xf32> to vector<16x10xf32>
      %27 = arith.subf %23, %26 : vector<16x10xf32>
      %28 = math.exp %27 : vector<16x10xf32>
      %cst_20 = arith.constant dense<0.000000e+00> : vector<16xf32>
      %29 = vector.multi_reduction <add>, %28, %cst_20 [1] : vector<16x10xf32> to vector<16xf32>
      %30 = vector.shape_cast %29 : vector<16xf32> to vector<16x1xf32>
      %31 = math.log %30 : vector<16x1xf32>
      %32 = arith.addf %31, %25 : vector<16x1xf32>
      %33 = vector.broadcast %32 : vector<16x1xf32> to vector<16x10xf32>
      %34 = arith.subf %23, %33 : vector<16x10xf32>
      %c0_21 = arith.constant 0 : index
      %c0_22 = arith.constant 0 : index
      %35 = vector.load %arg6[%c0_21, %c0_22] : memref<16x10xf32, #tpu.memory_space<vmem>>, vector<16x10xf32>
      tpu.vector_store %arg6[%c0_21, %c0_22], %34 {strides = array<i32>} : memref<16x10xf32, #tpu.memory_space<vmem>>, vector<16x10xf32>,
    } else {
    }
    return
  }
  func.func @transform_0(%arg0: i32) -> (i32, i32) {
    %c0_i32 = arith.constant 0 : i32
    %c0_i32_0 = arith.constant 0 : i32
    return %c0_i32, %arg0 : i32, i32
  }
  func.func @transform_1(%arg0: i32) -> (i32, i32) {
    %c0_i32 = arith.constant 0 : i32
    %c0_i32_0 = arith.constant 0 : i32
    return %arg0, %c0_i32 : i32, i32
  }
  func.func @transform_2(%arg0: i32) -> (i32, i32) {
    %c0_i32 = arith.constant 0 : i32
    %c0_i32_0 = arith.constant 0 : i32
    %c0_i32_1 = arith.constant 0 : i32
    return %c0_i32, %c0_i32_0 : i32, i32
  }
  func.func @transform_3(%arg0: i32) -> (i32, i32) {
    %c0_i32 = arith.constant 0 : i32
    %c0_i32_0 = arith.constant 0 : i32
    %c0_i32_1 = arith.constant 0 : i32
    return %c0_i32, %c0_i32_0 : i32, i32
  }
  func.func @transform_4(%arg0: i32) -> (i32, i32) {
    %c0_i32 = arith.constant 0 : i32
    %c0_i32_0 = arith.constant 0 : i32
    %c0_i32_1 = arith.constant 0 : i32
    return %c0_i32, %c0_i32_0 : i32, i32
  }
  func.func @transform_5(%arg0: i32) -> (i32, i32) {
    %c0_i32 = arith.constant 0 : i32
    %c0_i32_0 = arith.constant 0 : i32
    %c0_i32_1 = arith.constant 0 : i32
    return %c0_i32, %c0_i32_0 : i32, i32
  }
}

</mosaic_0001>

<bundles_post_ra>
// kernel: net_forward.2
= control target key start
LH: loop header
LB: loop body
LE: loop exit
PB: predicated region body
PF: predicated region fallthrough
CT: control target
= control target key end

     0   :  { %10 = vsyncpa [#allocation5], 0  ;;  %s3043_s0 = inlined_call_operand.vmem [shape: bf16[2,28,28,3], index: 0, kind: input, shape index: {}]   ;;  %s3044_s1 = inlined_call_operand.hbm [shape: bf16[9,3,32], index: 1, kind: input, shape index: {}]   ;;  %s3045_s2 = inlined_call_operand.hbm [shape: f32[1,32], index: 2, kind: input, shape index: {}]   ;;  %s3046_s3 = inlined_call_operand.hbm [shape: bf16[9,32,64], index: 3, kind: input, shape index: {}]   ;;  %s3047_s4 = inlined_call_operand.hbm [shape: f32[1,64], index: 4, kind: input, shape index: {}]   ;;  %s3048_s5 = inlined_call_operand.vmem [shape: bf16[2,12,12,64], index: 5, kind: output, shape index: {}]  }
   0x1   :  { %11 = vsyncpa [#allocation7], 0 }
   0x2   :  { %12 = vsyncpa [#allocation10], 0  ;;  %s2748_s18 = smov 0  }
   0x3 LB: > { %s2709_s19 = smov [#allocation6]   ;;  %s2754_s21 = sadd.s32 4294967295, %s2695_s18   ;;  %s2695_s18 = sphi %s2748_s18, %s18_s18  }
   0x4   : > { %s185_s20 = sshll.u32 %s2709_s19, 4  ;;  %p2046_p0 = scmp.ge.s32.totalorder %s2695_s18, 1  ;;  %s186_s20 = int_to_ptr.vmem [resolvable:$true] %s185_s20 }
   0x5   : > { %p159_p1 = scmp.lt.s32.totalorder %s2695_s18, 3  ;;  %p3049_p2 = scmp.eq.s32.totalorder %s2754_s21, 0 }
   0x6   : > { %s2710_s23 = smov [#allocation4]   ;;  %s2711_s26 = smov [#allocation8]  }
   0x7   : > { %p2759_p3 = pnand %p2046_p0, %p159_p1  ;;  %s171_s24 = sshll.u32 %s2710_s23, 4  ;;  %s2765_s24 = int_to_ptr.vmem [resolvable:$true] %s171_s24 }
   0x8   : > { %s195_s27 = sshll.u32 %s2711_s26, 4  ;;  %s2553_s30 = scalar_lea.hbm %s3045_s2, 16  ;;  %s2773_s27 = int_to_ptr.vmem [resolvable:$true] %s195_s27 }
   0x9   : > { %s3051_s22 = scalar_select %p2759_p3, 1, 0 }
   0xa   : > { %p2447_p4 = pneg %p2759_p3  ;;  %p2554_p6 = scmp.ne.s32.totalorder %s3045_s2, %s2553_s30 }
   0xb   : > { %p2560_p10 = scmp.lt.u32.totalorder %s2553_s30, %s3045_s2 }
   0xc   : > { %p2769_p5 = pnand %p3049_p2, %p2447_p4 }
   0xe   : > { %p2783_p7 = pneg %p2769_p5 }
  0x10   : > { %p2556_p8 = pnand %p2783_p7, %p2554_p6 }
  0x12   : > { %p2557_p9 = pneg %p2556_p8 }
  0x14   : > { %p2562_p11 = pnand %p2560_p10, %p2557_p9 }
  0x16   : > { %2565 = shalt.err (!%p2562_p11)
}
  0x17   : > { %s2566_s11 = scalar_lea.vmem %s186_s20, 16  ;;  %s2573_s12 = scalar_lea.vmem %s186_s20, 32 }
  0x18   : > { %p2567_p12 = scmp.ne.s32.totalorder %s186_s20, %s2566_s11  ;;  %p2574_p1 = scmp.lt.s32.totalorder %s186_s20, %s186_s20 }
  0x19   : > { %p2575_p4 = scmp.lt.s32.totalorder %s2573_s12, %s2566_s11 }
  0x1a   : > { %p2569_p13 = pnand %p2567_p12, %p2783_p7 }
  0x1b   : > { %p2576_p2 = por %p2575_p4, %p2574_p1 }
  0x1c   : > { %p2570_p0 = pneg %p2569_p13 }
  0x1e   : > { %p2577_p3 = pnand %p2576_p2, %p2570_p0 }
  0x20   : > { %2580 = shalt.err (!%p2577_p3)
}
  0x21   : > { %2453 = dma.hbm_to_vmem [thread:$0]  (!%p2769_p5), %s3045_s2, 16, %s186_s20, [#allocation7]  }
  0x22   : > { %s2581_s17 = scalar_lea.hbm %s3044_s1, 288 }
  0x23   : > { %p2582_p6 = scmp.ne.s32.totalorder %s3044_s1, %s2581_s17  ;;  %p2588_p2 = scmp.lt.u32.totalorder %s2581_s17, %s3044_s1 }
  0x25   : > { %p2584_p8 = pnand %p2582_p6, %p2783_p7 }
  0x27   : > { %p2585_p9 = pneg %p2584_p8 }
  0x29   : > { %p2590_p3 = pnand %p2588_p2, %p2585_p9 }
  0x2b   : > { %2593 = shalt.err (!%p2590_p3)
}
  0x2c   : > { %s2594_s20 = scalar_lea.vmem %s2765_s24, 288  ;;  %p2602_p13 = scmp.lt.s32.totalorder %s2765_s24, %s2765_s24 }
  0x2d   : > { %p2595_p10 = scmp.ne.s32.totalorder %s2765_s24, %s2594_s20  ;;  %p2603_p0 = scmp.lt.s32.totalorder %s2594_s20, %s2594_s20 }
  0x2f   : > { %p2597_p11 = pnand %p2595_p10, %p2783_p7  ;;  %p2604_p1 = por %p2603_p0, %p2602_p13 }
  0x31   : > { %p2598_p12 = pneg %p2597_p11 }
  0x33   : > { %p2605_p4 = pnand %p2604_p1, %p2598_p12 }
  0x35   : > { %2608 = shalt.err (!%p2605_p4)
}
  0x36   : > { %s2712_s29 = smov 32   ;;  %s2713_s30 = smov 2  }
  0x37   : > { %2450 = dma.hbm_to_vmem [thread:$0]  (!%p2769_p5), %s3044_s1, 288, %s2765_s24, [#allocation5], %s2712_s29, %s2712_s29, %s2713_s30  }
  0x38   : > { %s2609_s11 = scalar_lea.hbm %s3046_s3, 2304 }
  0x39   : > { %p2610_p6 = scmp.ne.s32.totalorder %s3046_s3, %s2609_s11  ;;  %p2616_p2 = scmp.lt.u32.totalorder %s2609_s11, %s3046_s3 }
  0x3b   : > { %p2612_p8 = pnand %p2610_p6, %p2783_p7 }
  0x3d   : > { %p2613_p9 = pneg %p2612_p8 }
  0x3f   : > { %p2618_p3 = pnand %p2616_p2, %p2613_p9 }
  0x41   : > { %2621 = shalt.err (!%p2618_p3)
}
  0x42   : > { %s2622_s24 = scalar_lea.vmem %s2773_s27, 2304  ;;  %p2630_p13 = scmp.lt.s32.totalorder %s2773_s27, %s2773_s27 }
  0x43   : > { %p2623_p10 = scmp.ne.s32.totalorder %s2773_s27, %s2622_s24  ;;  %p2631_p0 = scmp.lt.s32.totalorder %s2622_s24, %s2622_s24 }
  0x45   : > { %p2625_p11 = pnand %p2623_p10, %p2783_p7  ;;  %p2632_p1 = por %p2631_p0, %p2630_p13 }
  0x47   : > { %p2626_p12 = pneg %p2625_p11 }
  0x49   : > { %p2633_p4 = pnand %p2632_p1, %p2626_p12 }
  0x4b   : > { %2636 = shalt.err (!%p2633_p4)
}
  0x4c   : > { %s2714_s16 = smov 64   ;;  %s2715_s17 = smov 4  }
  0x4d   : > { %2456 = dma.hbm_to_vmem [thread:$0]  (!%p2769_p5), %s3046_s3, 2304, %s2773_s27, [#allocation7], %s2714_s16, %s2714_s16, %s2715_s17  }
  0x4e   : > { %s2716_s26 = smov [#allocation9]   ;;  %s2637_s30 = scalar_lea.hbm %s3047_s4, 16 }
  0x4f   : > { %s209_s28 = sshll.u32 %s2716_s26, 4  ;;  %p2638_p6 = scmp.ne.s32.totalorder %s3047_s4, %s2637_s30  ;;  %s210_s28 = int_to_ptr.vmem [resolvable:$true] %s209_s28 }
  0x50   : > { %p2644_p2 = scmp.lt.u32.totalorder %s2637_s30, %s3047_s4 }
  0x51   : > { %p2640_p8 = pnand %p2638_p6, %p2783_p7 }
  0x53   : > { %p2641_p9 = pneg %p2640_p8 }
  0x55   : > { %p2646_p3 = pnand %p2644_p2, %p2641_p9 }
  0x57   : > { %2649 = shalt.err (!%p2646_p3)
}
  0x58   : > { %s2650_s27 = scalar_lea.vmem %s210_s28, 16  ;;  %s2657_s11 = scalar_lea.vmem %s210_s28, 32 }
  0x59   : > { %p2651_p10 = scmp.ne.s32.totalorder %s210_s28, %s2650_s27  ;;  %p2658_p13 = scmp.lt.s32.totalorder %s210_s28, %s210_s28 }
  0x5a   : > { %p2659_p0 = scmp.lt.s32.totalorder %s2657_s11, %s2650_s27 }
  0x5b   : > { %p2653_p11 = pnand %p2651_p10, %p2783_p7 }
  0x5c   : > { %p2660_p1 = por %p2659_p0, %p2658_p13 }
  0x5d   : > { %p2654_p12 = pneg %p2653_p11 }
  0x5f   : > { %p2661_p4 = pnand %p2660_p1, %p2654_p12 }
  0x61   : > { %2664 = shalt.err (!%p2661_p4)
}
  0x62   : > { %2459 = dma.hbm_to_vmem [thread:$0]  (!%p2769_p5), %s3047_s4, 16, %s210_s28, [#allocation10]  }
  0x63   : > { %p3054_p6 = scmp.ne.s32.totalorder %s3051_s22, 0 }
  0x64   : > { %p3055_p8 = scmp.eq.s32.totalorder (!%p3054_p6), %s2754_s21, 0 }
  0x65   : > { %230 = sbr.rel (%p3054_p6) target bundleno = 698 (0x2ba), region = 40 }
  0x6c   : > { %2682 = dma.done.wait (%p3055_p8), [#allocation5], 288   ;;  %p3056_p7 = pmov %p3055_p8 }
  0x6e   : > { %2684 = vsyncadd (%p3056_p7), [#allocation5], 4294967008  ;;  %p3057_p9 = pmov %p3056_p7 }
  0x6f   : > { %p3058_p2 = pmov %p3056_p7 }
  0x70   : > { %2686 = dma.done.wait (%p3057_p9), [#allocation7], 2320  }
  0x71   : > { %2688 = vsyncadd (%p3058_p2), [#allocation7], 4294964976  ;;  %p3059_p3 = pmov %p3058_p2 }
  0x72   : > { %p3060_p5 = pmov %p3058_p2 }
  0x73   : > { %2690 = dma.done.wait (%p3059_p3), [#allocation10], 16  }
  0x74   : > { %2692 = vsyncadd (%p3060_p5), [#allocation10], 4294967280  ;;  %p270_p10 = scmp.lt.s32.totalorder %s2754_s21, 1  ;;  %s2889_s19 = smov 0  }
  0x76   : > { %s3062_s21 = smov (!%p270_p10, %s2754_s21), 1 }
  0x77   : > { %s2429_s22 = smul.u32 448, %s3062_s21 }
  0x78   : > { %s2430_s25 = smul.u32 96, %s3062_s21 }
  0x79   : > { %s2882_s15 = scalar_lea.vmem %s3043_s0, %s2429_s22 }
  0x7a   : > { %s2887_s17 = scalar_lea.vmem %s3048_s5, %s2430_s25 }
  0x7b LB: >> { %vm331_vm0 = vcmask 1040384   ;;  %vm332_vm1 = vcmask 1041408   ;;  %v603_v0 = vld [vmem:[#allocation4 + $0x8] sm:$0x3]  ;;  %v2717_v1 = vmov 65535   ;;  %s2198_s21 = sshll.u32 %s2699_s19, 4  ;;  %s2699_s19 = sphi %s2889_s19, %s286_s19  }
  0x7c   : >> { %v333_v2 = vsel %vm331_vm0, 4294967295, %v2717_v1  ;;  %v297_v3 = vld [vmem:[#allocation4 + $0x2] sm:$0x3]  ;;  %v685_v5 = vld [vmem:[#allocation4 + $0xa] sm:$0x3]  ;;  %s2902_s23 = scalar_lea.vmem %s2882_s15, %s2198_s21  ;;  %vm324_vm3 = vcmask 23552  }
  0x7d   : >> { %v2894_v4 = vsel %vm332_vm1, %v333_v2, 0  ;;  %v294_v6 = vld [vmem:[#allocation4] sm:$0x3]  ;;  %v291_v12 = vld [vmem:[%s2902_s23 + $0x4] sm:$0xf]  ;;  %vm453_vm4 = vcmask 1046528  }
  0x7e   : >> { %v628_v7 = vand.u32 %v603_v0, %v2894_v4  ;;  %v336_v8 = vand.u32 %v2894_v4, %v297_v3  ;;  %v699_v9 = vand.u32 %v685_v5, %v2894_v4  ;;  %v396_v10 = vand.u32 %v2894_v4, %v294_v6  ;;  %v290_v11 = vld [vmem:[%s2902_s23] sm:$0xf]  ;;  %v2909_v13 = vld [vmem:[%s2902_s23 + $0x8] sm:$0xf]  ;;  %v295_v14 = vld [vmem:[%s2902_s23 + $0xc] sm:$0x3] }
  0x7f   : >> { %v2061_v15 = vcombine.low %v290_v11, %v291_v12  ;;  %v2072_v16 = vld [vmem:[%s2902_s23 + $0x10] sm:$0xf]  ;;  %v2073_v17 = vld [vmem:[%s2902_s23 + $0x14] sm:$0xf]  ;;  %v2915_v18 = vcombine.low %v2909_v13, %v295_v14  ;;  %v2918_v19 = vld [vmem:[%s2902_s23 + $0x18] sm:$0xf] }
  0x80   : >> { %2295 = vmatprep.subr.bf16.mxu0 %v628_v7  ;;  %2271 = vmatprep.subr.bf16.mxu1 %v336_v8  ;;  %v2920_v20 = vcombine.low %v2072_v16, %v2073_v17  ;;  %v2080_v21 = vld [vmem:[%s2902_s23 + $0x1c] sm:$0x3]  ;;  %v2084_v22 = vld [vmem:[%s2902_s23 + $0x10] sm:$0xe]  ;;  %vm308_vm2 = vsmask.f32 7424 }
  0x81   : >> { %2296 = vmatpush3.bf16.msra.mxu0 %v628_v7  ;;  %2272 = vmatpush3.bf16.msra.mxu1 %v336_v8  ;;  %v310_v23 = vshrl.u32 %v2061_v15, 16  ;;  %v312_v24 = vshll.u32 %v2061_v15, 16  ;;  %v2081_v25 = vcombine.low %v2918_v19, %v2080_v21  ;;  %v2085_v26 = vcombine.low %v2084_v22, %v2073_v17  ;;  %v763_v40 = vld [vmem:[#allocation4 + $0xc] sm:$0x3]  ;;  %v449_v43 = vld [vmem:[#allocation4 + $0x4] sm:$0x3] }
  0x82   : >> { %2301 = vmatprep.subr.bf16.mxu0 %v699_v9  ;;  %2277 = vmatprep.subr.bf16.mxu1 %v396_v10  ;;  %v317_v27 = vshll.u32 %v2915_v18, 16  ;;  %v321_v28 = vshrl.u32 %v2915_v18, 16  ;;  %v607_v29 = vshrl.u32 %v2920_v20, 16  ;;  %v609_v30 = vshll.u32 %v2920_v20, 16  ;;  %v447_v50 = vld [vmem:[%s2902_s23] sm:$0xe] }
  0x83   : >> { %v314_v31 = vrot.slane %v312_v24, 1  ;;  %v614_v32 = vshll.u32 %v2081_v25, 16  ;;  %v618_v33 = vshrl.u32 %v2081_v25, 16  ;;  %v689_v38 = vrot.slane %v2085_v26, 1  ;;  %v293_v52 = vld [vmem:[%s2902_s23 + $0xc] sm:$0x1] }
  0x84   : >> { %v319_v34 = vrot.slane %v317_v27, 1  ;;  %v611_v35 = vrot.slane %v609_v30, 1  ;;  %v690_v39 = vrot.slane %v2081_v25, 1  ;;  %v781_v47 = vand.u32 %v763_v40, %v2894_v4  ;;  %v2089_v55 = vld [vmem:[%s2902_s23 + $0x20] sm:$0xf]  ;;  %s1021_s26 = scalar_lea.vmem [#allocation2], %s2198_s21 }
  0x85   : >> { %v315_v36 = vor.u32 %v314_v31, %v310_v23  ;;  %v616_v37 = vrot.slane %v614_v32, 1  ;;  %v464_v49 = vand.u32 %v449_v43, %v2894_v4  ;;  %v2068_v51 = vcombine.low %v447_v50, %v291_v12  ;;  %v2090_v56 = vld [vmem:[%s2902_s23 + $0x24] sm:$0xf]  ;;  %v838_v58 = vld [vmem:[#allocation4 + $0xe] sm:$0x3]  ;;  %s286_s19 = sadd.s32 1, %s2699_s19  }
  0x86   : >> { %v323_v41 = vor.u32 %v321_v28, %v319_v34  ;;  %v612_v42 = vor.u32 %v611_v35, %v607_v29  ;;  %v691_v48 = vsel %vm453_vm4, %v689_v38, %v690_v39  ;;  %v455_v54 = vrot.slane %v2915_v18, 1  ;;  %v528_v59 = vld [vmem:[#allocation4 + $0x6] sm:$0x3]  ;;  %v2097_v60 = vld [vmem:[%s2902_s23 + $0x2c] sm:$0x3]  ;;  %p283_p11 = scmp.ge.s32.totalorder %s286_s19, 26  }
  0x87   : >> { %v320_v44 = vsel %vm308_vm2, %v315_v36, %v319_v34  ;;  %v620_v45 = vor.u32 %v618_v33, %v616_v37  ;;  %v454_v53 = vrot.slane %v2068_v51, 1  ;;  %v2065_v57 = vcombine.low %v2909_v13, %v293_v52  ;;  %v2091_v0 = vld [vmem:[%s2902_s23 + $0x28] sm:$0xf]  ;;  %v2092_v8 = vld [vmem:[%s2902_s23 + $0x2c] sm:$0x1]  ;;  %s2976_s28 = smov (%p283_p11), 0  }
  0x88   : >> { %2273 = vmatprep.mubr.msk.bf16.mxu1 %vm324_vm3, %v320_v44  ;;  %v617_v46 = vsel %vm308_vm2, %v612_v42, %v616_v37  ;;  %v2093_v61 = vcombine.low %v2089_v55, %v2090_v56  ;;  %v863_v63 = vand.u32 %v838_v58, %v2894_v4  ;;  %v546_v1 = vand.u32 %v528_v59, %v2894_v4  ;;  %v920_v11 = vld [vmem:[#allocation4 + $0x10] sm:$0x3]  ;;  %v2075_v18 = vld [vmem:[%s2902_s23 + $0x1c] sm:$0x1]  ;;  %v2105_v29 = vld [vmem:[#allocation6] ss:$0 sm:$0xff] }
  0x89   : >> { %2297 = vmatprep.mubr.msk.bf16.mxu0 %vm324_vm3, %v617_v46  ;;  %2274 = vmatmul.mubr.msk.bf16.vlgmr.msra.gmra.mrb[0].mxu1 %vm324_vm3, %v323_v41  ;;  %v456_v62 = vsel %vm453_vm4, %v454_v53, %v455_v54  ;;  %v2098_v2 = vcombine.low %v2091_v0, %v2097_v60  ;;  %v2094_v12 = vcombine.low %v2091_v0, %v2092_v8  ;;  %vm1022_vm5 = vcmask 257024  }
  0x8a   : >> { %2298 = vmatmul.mubr.msk.bf16.vlgmr.msra.gmra.mrb[0].mxu0 %vm324_vm3, %v620_v45  ;;  %2278 = vmatpush3.bf16.msra.mxu1 %v396_v10  ;;  %v844_v3 = vshll.u32 %v2093_v61, 16  ;;  %v842_v5 = vshrl.u32 %v2093_v61, 16  ;;  %v934_v13 = vand.u32 %v920_v11, %v2894_v4  ;;  %v2077_v22 = vcombine.low %v2918_v19, %v2075_v18 }
  0x8b   : >> { %2302 = vmatpush3.bf16.msra.mxu0 %v699_v9  ;;  %2279 = vmatprep.mubr.msk.bf16.mxu1 %vm324_vm3, %v2061_v15  ;;  %v849_v7 = vshll.u32 %v2098_v2, 16  ;;  %v2101_v15 = vld [vmem:[%s2902_s23 + $0x20] sm:$0xe]  ;;  %v853_v17 = vshrl.u32 %v2098_v2, 16  ;;  %v925_v4 = vrot.slane %v2098_v2, 1  ;;  %vm1026_vm6 = vcmask 253952  }
  0x8c   : >> { %2303 = vmatprep.mubr.msk.bf16.mxu0 %vm324_vm3, %v691_v48  ;;  %2307 = vmatprep.subr.bf16.mxu0 %v781_v47  ;;  %v846_v6 = vrot.slane %v844_v3, 1  ;;  %v2102_v16 = vcombine.low %v2101_v15, %v2090_v56 }
  0x8d   : >> { %2283 = vmatprep.subr.bf16.mxu1 %v464_v49  ;;  %v851_v10 = vrot.slane %v849_v7, 1 }
  0x8e   : >> { %v847_v9 = vor.u32 %v846_v6, %v842_v5  ;;  %v924_v21 = vrot.slane %v2102_v16, 1 }
  0x8f   : >> { %v855_v23 = vor.u32 %v853_v17, %v851_v10 }
  0x90   : >> { %v852_v14 = vsel %vm308_vm2, %v847_v9, %v851_v10  ;;  %v926_v24 = vsel %vm453_vm4, %v924_v21, %v925_v4 }
  0x95   : >> { %2280 = vmatmul.mubr.msk.bf16.vlgmr.msra.gmra.mrb[0].mxu1 %vm324_vm3, %v2065_v57 }
  0x96   : >> { %2304 = vmatmul.mubr.msk.bf16.vlgmr.msra.gmra.mrb[0].mxu0 %vm324_vm3, %v690_v39  ;;  %2284 = vmatpush3.bf16.msra.mxu1 %v464_v49 }
  0x97   : >> { %2308 = vmatpush3.bf16.msra.mxu0 %v781_v47  ;;  %2285 = vmatprep.mubr.msk.bf16.mxu1 %vm324_vm3, %v456_v62 }
  0x98   : >> { %2309 = vmatprep.mubr.msk.bf16.mxu0 %vm324_vm3, %v2093_v61  ;;  %2313 = vmatprep.subr.bf16.mxu0 %v863_v63 }
  0x99   : >> { %2289 = vmatprep.subr.bf16.mxu1 %v546_v1 }
  0xa1   : >> { %2286 = vmatmul.mubr.msk.bf16.vlgmr.msra.gmra.mrb[0].mxu1 %vm324_vm3, %v455_v54 }
  0xa2   : >> { %2310 = vmatmul.mubr.msk.bf16.vlgmr.msra.gmra.mrb[0].mxu0 %vm324_vm3, %v2094_v12  ;;  %2290 = vmatpush3.bf16.msra.mxu1 %v546_v1 }
  0xa3   : >> { %2314 = vmatpush3.bf16.msra.mxu0 %v863_v63  ;;  %2291 = vmatprep.mubr.msk.bf16.mxu1 %vm324_vm3, %v2920_v20 }
  0xa4   : >> { %2315 = vmatprep.mubr.msk.bf16.mxu0 %vm324_vm3, %v852_v14  ;;  %2319 = vmatprep.subr.bf16.mxu0 %v934_v13 }
  0xad   : >> { %2292 = vmatmul.mubr.msk.bf16.vlgmr.msra.gmra.mrb[0].mxu1 %vm324_vm3, %v2077_v22 }
  0xae   : >> { %2316 = vmatmul.mubr.msk.bf16.vlgmr.msra.gmra.mrb[0].mxu0 %vm324_vm3, %v855_v23 }
  0xaf   : >> { %2320 = vmatpush3.bf16.msra.mxu0 %v934_v13  ;;  %2321 = vmatprep.mubr.msk.bf16.mxu0 %vm324_vm3, %v926_v24 }
  0xba   : >> { %2322 = vmatmul.mubr.msk.bf16.vlgmr.msra.gmra.mrb[0].mxu0 %vm324_vm3, %v925_v4 }
 0x180   : >> { %v2293_v20 = vpop.f32.mrb[0].mxu1 }
 0x181   : >> { %v582_v25 = vpop.f32.mrb[1].mxu1 }
 0x182   : >> { %v2294_v26 = vpop.f32.mrb[2].mxu1 }
 0x183   : >> { %v585_v27 = vpop.f32.mrb[3].mxu1 }
 0x18d   : >> { %v2323_v28 = vpop.f32.mrb[0].mxu0 }
 0x18e   : >> { %v2397_v30 = vadd.f32 %v2323_v28, %v2293_v20  ;;  %v970_v19 = vpop.f32.mrb[1].mxu0 }
 0x18f   : >> { %v2398_v31 = vadd.f32 %v970_v19, %v582_v25  ;;  %v2324_v32 = vpop.f32.mrb[2].mxu0 }
 0x190   : >> { %v998_v33 = vadd.f32 %v2397_v30, %v2105_v29  ;;  %v2399_v34 = vadd.f32 %v2324_v32, %v2294_v26  ;;  %v973_v35 = vpop.f32.mrb[3].mxu0 }
 0x191   : >> { %v996_v36 = vadd.f32 %v2398_v31, %v2105_v29  ;;  %v2400_v37 = vadd.f32 %v973_v35, %v585_v27 }
 0x192   : >> { %v1002_v38 = vmax.f32 %v998_v33, 0.0  ;;  %v999_v39 = vadd.f32 %v2399_v34, %v2105_v29 }
 0x193   : >> { %v1000_v40 = vmax.f32 %v996_v36, 0.0  ;;  %v997_v41 = vadd.f32 %v2400_v37, %v2105_v29  ;;  %285 = sbr.rel (!%p283_p11) target bundleno = 123 (0x7b), region = 141 }
 0x194   : >> { %v2201_v42 = vpack.c.bf16 %v1002_v38, %v1002_v38  ;;  %v1003_v43 = vmax.f32 %v999_v39, 0.0 }
 0x195   : >> { %v2199_v44 = vpack.c.bf16 %v1000_v40, %v1000_v40  ;;  %v1001_v45 = vmax.f32 %v997_v41, 0.0 }
 0x196   : >> { %1025 = vst.msk [vmem:[%s1021_s26 + $0x8] sm:$0xf] %vm1022_vm5, %v2201_v42  ;;  %v2202_v46 = vpack.c.bf16 %v1003_v43, %v1003_v43 }
 0x197   : >> { %1023 = vst.msk [vmem:[%s1021_s26] sm:$0xf] %vm1022_vm5, %v2199_v44  ;;  %v2200_v47 = vpack.c.bf16 %v1001_v45, %v1001_v45 }
 0x198   : >> { %1027 = vst.msk [vmem:[%s1021_s26 + $0xc] sm:$0x1] %vm1026_vm6, %v2202_v46 }
 0x199   : >> { %1024 = vst.msk [vmem:[%s1021_s26 + $0x4] sm:$0xf] %vm1022_vm5, %v2200_v47 }
 0x19a LB: >> { %v2521_v48 = vld [vmem:[#allocation8 + $0x10] sm:$0xff]   ;;  %v2522_v49 = vld [vmem:[#allocation8] sm:$0xff]   ;;  %vm1088_vm7 = vcmask 261120   ;;  %v2523_v50 = vld [vmem:[#allocation8 + $0x18] sm:$0xff]   ;;  %s2204_s20 = sshll.u32 %s2703_s28, 4  ;;  %s1850_s30 = smul.u32 24, %s2703_s28  ;;  %s2703_s28 = sphi %s2976_s28, %s1033_s28  }
 0x19b   : >> { %2325 = vmatprep.subr.bf16.mxu0 %v2521_v48  ;;  %2333 = vmatprep.subr.bf16.mxu1 %v2522_v49  ;;  %v2524_v51 = vld [vmem:[#allocation8 + $0x8] sm:$0xff]   ;;  %s2982_s29 = scalar_lea.vmem [#allocation2], %s2204_s20  ;;  %v2527_v58 = vld [vmem:[#allocation8 + $0x20] sm:$0xff]   ;;  %v2529_v62 = vld [vmem:[#allocation8 + $0x30] sm:$0xff]   ;;  %vm1852_vm8 = vcmask 523264   ;;  %s1033_s28 = sadd.s32 1, %s2703_s28  }
 0x19c   : >> { %2326 = vmatpush3.bf16.msra.mxu0 %v2521_v48  ;;  %2334 = vmatpush3.bf16.msra.mxu1 %v2522_v49  ;;  %v2531_v2 = vld [vmem:[#allocation8 + $0x38] sm:$0xff]   ;;  %v2530_v13 = vld [vmem:[#allocation8 + $0x28] sm:$0xff]   ;;  %v2536_v15 = vld [vmem:[#allocation8 + $0x50] sm:$0xff]   ;;  %s1851_s6 = scalar_lea.vmem [#allocation3], %s1850_s30  ;;  %p1030_p12 = scmp.ge.s32.totalorder %s1033_s28, 24  }
 0x19d   : >> { %2327 = vmatprep.subr.bf16.mxu0 %v2523_v50  ;;  %2335 = vmatprep.subr.bf16.mxu1 %v2524_v51  ;;  %v2533_v16 = vld [vmem:[#allocation8 + $0x40] sm:$0xff]   ;;  %v2538_v23 = vld [vmem:[#allocation8 + $0x58] sm:$0xff]   ;;  %v2537_v29 = vld [vmem:[#allocation8 + $0x48] sm:$0xff]   ;;  %s3034_s7 = smov (%p1030_p12), 0  }
 0x19e   : >> { %v2543_v33 = vld [vmem:[#allocation8 + $0x70] sm:$0xff]   ;;  %v2541_v35 = vld [vmem:[#allocation8 + $0x60] sm:$0xff]   ;;  %v2545_v38 = vld [vmem:[#allocation8 + $0x78] sm:$0xff]  }
 0x1a0   : >> { %v1037_v52 = vld [vmem:[%s2982_s29] sm:$0xf]  ;;  %v1038_v53 = vld [vmem:[%s2982_s29 + $0x4] sm:$0xf]  ;;  %v1039_v54 = vld [vmem:[%s2982_s29 + $0x8] sm:$0xf]  ;;  %2328 = vmatpush3.bf16.msra.mxu0 %v2523_v50  ;;  %2336 = vmatpush3.bf16.msra.mxu1 %v2524_v51 }
 0x1a1   : >> { %v1044_v55 = vld [vmem:[%s2982_s29 + $0xc] sm:$0x1]  ;;  %v2113_v56 = vcombine.low %v1037_v52, %v1038_v53  ;;  %v2119_v61 = vcombine.low %v1039_v54, %v1039_v54  ;;  %2341 = vmatprep.subr.bf16.mxu0 %v2527_v58  ;;  %2349 = vmatprep.subr.bf16.mxu1 %v2529_v62  ;;  %v1209_v3 = vld [vmem:[%s2982_s29] sm:$0xe]  ;;  %v2534_v11 = vld [vmem:[%s2982_s29 + $0x10] sm:$0xff]  }
 0x1a2   : >> { %v2988_v57 = vcombine.low %v1039_v54, %v1044_v55  ;;  %v2124_v6 = vcombine.low %v1209_v3, %v1038_v53  ;;  %v2535_v17 = vld [vmem:[%s2982_s29 + $0x18] ss:$0 sps:$4 sm:$0xff]   ;;  %v2139_v18 = vld [vmem:[%s2982_s29 + $0x10] sm:$0xf]  ;;  %v2140_v21 = vld [vmem:[%s2982_s29 + $0x14] sm:$0xf] }
 0x1a3   : >> { %v1062_v59 = vshrl.u32 %v2113_v56, 16  ;;  %v1064_v60 = vshll.u32 %v2113_v56, 16  ;;  %2337 = vmatprep.mubr.msk.bf16.mxu1 %vm1088_vm7, %v2113_v56  ;;  %v2143_v4 = vcombine.low %v2139_v18, %v2140_v21  ;;  %v2540_v22 = vld [vmem:[%s2982_s29 + $0x18] sm:$0x1f]   ;;  %v2149_v24 = vld [vmem:[%s2982_s29 + $0x10] sm:$0xe] }
 0x1a4   : >> { %v1069_v63 = vshll.u32 %v2988_v57, 16  ;;  %v1073_v0 = vshrl.u32 %v2988_v57, 16  ;;  %v1220_v7 = vrot.slane %v2988_v57, 1  ;;  %2338 = vmatmul.mubr.msk.bf16.vlgmr.msra.gmra.mrb[0].mxu1 %vm1088_vm7, %v2119_v61  ;;  %v1219_v10 = vrot.slane %v2124_v6, 1  ;;  %v2165_v39 = vld [vmem:[%s2982_s29 + $0x20] sm:$0xf] }
 0x1a5   : >> { %v1066_v1 = vrot.slane %v1064_v60, 1  ;;  %2350 = vmatpush3.bf16.msra.mxu1 %v2529_v62  ;;  %2353 = vmatprep.mubr.msk.bf16.mxu1 %vm1088_vm7, %v2534_v11  ;;  %v1400_v20 = vshrl.u32 %v2143_v4, 16  ;;  %v1402_v25 = vshll.u32 %v2143_v4, 16  ;;  %v1407_v26 = vshll.u32 %v2540_v22, 16  ;;  %v2166_v40 = vld [vmem:[%s2982_s29 + $0x24] sm:$0xf] }
 0x1a6   : >> { %v1071_v5 = vrot.slane %v1069_v63, 1  ;;  %2351 = vmatprep.subr.bf16.mxu1 %v2531_v2  ;;  %v1221_v14 = vsel %vm453_vm4, %v1219_v10, %v1220_v7  ;;  %v2150_v27 = vcombine.low %v2149_v24, %v2140_v21  ;;  %v1493_v28 = vrot.slane %v2540_v22, 1  ;;  %v2550_v42 = vld [vmem:[%s2982_s29 + $0x28] sm:$0x1f]   ;;  %v2546_v44 = vld [vmem:[%s2982_s29 + $0x20] sm:$0xff]   ;;  %v2547_v56 = vld [vmem:[#allocation8 + $0x80] sm:$0xff]  }
 0x1a7   : >> { %v1067_v8 = vor.u32 %v1066_v1, %v1062_v59  ;;  %v1404_v30 = vrot.slane %v1402_v25, 1  ;;  %v1409_v19 = vrot.slane %v1407_v26, 1  ;;  %v1411_v31 = vshrl.u32 %v2540_v22, 16  ;;  %v2175_v49 = vld [vmem:[%s2982_s29 + $0x20] sm:$0xe] }
 0x1a8   : >> { %v1075_v9 = vor.u32 %v1073_v0, %v1071_v5  ;;  %v1492_v32 = vrot.slane %v2150_v27, 1  ;;  %v2169_v41 = vcombine.low %v2165_v39, %v2166_v40  ;;  %v1680_v47 = vshll.u32 %v2550_v42, 16  ;;  %v2544_v50 = vld [vmem:[#allocation8 + $0x68] sm:$0xff]   ;;  %v2548_v60 = vld [vmem:[%s2982_s29 + $0x28] ss:$0 sps:$4 sm:$0xff]  }
 0x1a9   : >> { %v1072_v12 = vsel %vm308_vm2, %v1067_v8, %v1071_v5  ;;  %2352 = vmatpush3.bf16.msra.mxu1 %v2531_v2  ;;  %v1405_v34 = vor.u32 %v1404_v30, %v1400_v20  ;;  %v1413_v43 = vor.u32 %v1411_v31, %v1409_v19  ;;  %v1684_v48 = vshrl.u32 %v2550_v42, 16  ;;  %v2551_v61 = vld [vmem:[#allocation8 + $0x88] sm:$0xff]  }
 0x1aa   : >> { %2329 = vmatprep.mubr.msk.bf16.mxu0 %vm1088_vm7, %v1072_v12  ;;  %2365 = vmatprep.subr.bf16.mxu1 %v2536_v15  ;;  %v1494_v36 = vsel %vm453_vm4, %v1492_v32, %v1493_v28  ;;  %v1673_v45 = vshrl.u32 %v2169_v41, 16  ;;  %v1675_v46 = vshll.u32 %v2169_v41, 16  ;;  %v2176_v51 = vcombine.low %v2175_v49, %v2166_v40 }
 0x1ab   : >> { %2330 = vmatmul.mubr.msk.bf16.vlgmr.msra.gmra.mrb[0].mxu0 %vm1088_vm7, %v1075_v9  ;;  %v1410_v37 = vsel %vm308_vm2, %v1405_v34, %v1409_v19  ;;  %v1682_v53 = vrot.slane %v1680_v47, 1 }
 0x1ac   : >> { %2342 = vmatpush3.bf16.msra.mxu0 %v2527_v58  ;;  %2345 = vmatprep.mubr.msk.bf16.mxu0 %vm1088_vm7, %v1221_v14  ;;  %v1677_v52 = vrot.slane %v1675_v46, 1  ;;  %v1765_v57 = vrot.slane %v2176_v51, 1  ;;  %v1766_v58 = vrot.slane %v2550_v42, 1 }
 0x1ad   : >> { %2343 = vmatprep.subr.bf16.mxu0 %v2530_v13  ;;  %2354 = vmatmul.mubr.msk.bf16.vlgmr.msra.gmra.mrb[4].mxu1 %vm1088_vm7, %v2535_v17  ;;  %v1686_v55 = vor.u32 %v1684_v48, %v1682_v53 }
 0x1ae   : >> { %2366 = vmatpush3.bf16.msra.mxu1 %v2536_v15  ;;  %2369 = vmatprep.mubr.msk.bf16.mxu1 %vm1088_vm7, %v1494_v36  ;;  %v1678_v54 = vor.u32 %v1677_v52, %v1673_v45  ;;  %v1767_v62 = vsel %vm453_vm4, %v1765_v57, %v1766_v58 }
 0x1af   : >> { %2367 = vmatprep.subr.bf16.mxu1 %v2538_v23 }
 0x1b0   : >> { %2344 = vmatpush3.bf16.msra.mxu0 %v2530_v13  ;;  %v1683_v59 = vsel %vm308_vm2, %v1678_v54, %v1682_v53  ;;  %v2181_v53 = vld [vmem:[#allocation9] ss:$0 sm:$0xff] }
 0x1b1   : >> { %2357 = vmatprep.subr.bf16.mxu0 %v2533_v16 }
 0x1b2   : >> { %2368 = vmatpush3.bf16.msra.mxu1 %v2538_v23 }
 0x1b3   : >> { %2346 = vmatmul.mubr.msk.bf16.vlgmr.msra.gmra.mrb[4].mxu0 %vm1088_vm7, %v1220_v7  ;;  %2381 = vmatprep.subr.bf16.mxu1 %v2543_v33 }
 0x1b4   : >> { %2358 = vmatpush3.bf16.msra.mxu0 %v2533_v16  ;;  %2361 = vmatprep.mubr.msk.bf16.mxu0 %vm1088_vm7, %v1410_v37 }
 0x1b5   : >> { %2359 = vmatprep.subr.bf16.mxu0 %v2537_v29  ;;  %2370 = vmatmul.mubr.msk.bf16.vlgmr.msra.gmra.mrb[8].mxu1 %vm1088_vm7, %v1493_v28 }
 0x1b6   : >> { %2382 = vmatpush3.bf16.msra.mxu1 %v2543_v33  ;;  %2385 = vmatprep.mubr.msk.bf16.mxu1 %vm1088_vm7, %v1683_v59 }
 0x1b7   : >> { %2383 = vmatprep.subr.bf16.mxu1 %v2545_v38 }
 0x1b8   : >> { %2360 = vmatpush3.bf16.msra.mxu0 %v2537_v29 }
 0x1b9   : >> { %2373 = vmatprep.subr.bf16.mxu0 %v2541_v35 }
 0x1ba   : >> { %2384 = vmatpush3.bf16.msra.mxu1 %v2545_v38 }
 0x1bb   : >> { %2362 = vmatmul.mubr.msk.bf16.vlgmr.msra.gmra.mrb[8].mxu0 %vm1088_vm7, %v1413_v43 }
 0x1bc   : >> { %2374 = vmatpush3.bf16.msra.mxu0 %v2541_v35  ;;  %2377 = vmatprep.mubr.msk.bf16.mxu0 %vm1088_vm7, %v2546_v44 }
 0x1bd   : >> { %2375 = vmatprep.subr.bf16.mxu0 %v2544_v50  ;;  %2386 = vmatmul.mubr.msk.bf16.vlgmr.msra.gmra.mrb[12].mxu1 %vm1088_vm7, %v1686_v55 }
 0x1c0   : >> { %2376 = vmatpush3.bf16.msra.mxu0 %v2544_v50 }
 0x1c1   : >> { %2389 = vmatprep.subr.bf16.mxu0 %v2547_v56 }
 0x1c3   : >> { %2378 = vmatmul.mubr.msk.bf16.vlgmr.msra.gmra.mrb[12].mxu0 %vm1088_vm7, %v2548_v60 }
 0x1c4   : >> { %2390 = vmatpush3.bf16.msra.mxu0 %v2547_v56  ;;  %2393 = vmatprep.mubr.msk.bf16.mxu0 %vm1088_vm7, %v1767_v62 }
 0x1c5   : >> { %2391 = vmatprep.subr.bf16.mxu0 %v2551_v61 }
 0x1c8   : >> { %2392 = vmatpush3.bf16.msra.mxu0 %v2551_v61 }
 0x1cb   : >> { %2394 = vmatmul.mubr.msk.bf16.vlgmr.msra.gmra.mrb[16].mxu0 %vm1088_vm7, %v1766_v58 }
 0x277   : >> { %v2339_v63 = vpop.f32.mrb[0].mxu1 }
 0x278   : >> { %v1195_v0 = vpop.f32.mrb[1].mxu1 }
 0x279   : >> { %v2340_v1 = vpop.f32.mrb[2].mxu1 }
 0x27a   : >> { %v1198_v2 = vpop.f32.mrb[3].mxu1 }
 0x27e   : >> { %v2331_v3 = vpop.f32.mrb[0].mxu0 }
 0x27f   : >> { %v1204_v5 = vadd.f32 %v2339_v63, %v2331_v3  ;;  %v1129_v6 = vpop.f32.mrb[1].mxu0 }
 0x280   : >> { %v1196_v7 = vadd.f32 %v1195_v0, %v1129_v6  ;;  %v2332_v8 = vpop.f32.mrb[2].mxu0  ;;  %v2355_v11 = vpop.f32.mrb[4].mxu1 }
 0x281   : >> { %v1132_v9 = vpop.f32.mrb[3].mxu0  ;;  %v1363_v12 = vpop.f32.mrb[5].mxu1 }
 0x282   : >> { %v1199_v10 = vadd.f32 %v1198_v2, %v1132_v9  ;;  %v2356_v13 = vpop.f32.mrb[6].mxu1 }
 0x283   : >> { %v1366_v15 = vpop.f32.mrb[7].mxu1 }
 0x286   : >> { %v2347_v14 = vpop.f32.mrb[4].mxu0 }
 0x287   : >> { %v1290_v16 = vadd.f32 %v2347_v14, %v1204_v5  ;;  %v1274_v17 = vpop.f32.mrb[5].mxu0 }
 0x288   : >> { %v1288_v18 = vadd.f32 %v1274_v17, %v1196_v7  ;;  %v2348_v21 = vpop.f32.mrb[6].mxu0  ;;  %v2371_v20 = vpop.f32.mrb[8].mxu1 }
 0x289   : >> { %v1379_v4 = vadd.f32 %v2355_v11, %v1290_v16  ;;  %v1277_v22 = vpop.f32.mrb[7].mxu0  ;;  %v1547_v26 = vpop.f32.mrb[9].mxu1 }
 0x28a   : >> { %v1289_v23 = vadd.f32 %v1277_v22, %v1199_v10  ;;  %v1377_v24 = vadd.f32 %v1363_v12, %v1288_v18  ;;  %v2372_v27 = vpop.f32.mrb[10].mxu1 }
 0x28b   : >> { %v1550_v29 = vpop.f32.mrb[11].mxu1 }
 0x28c   : >> { %v1378_v25 = vadd.f32 %v1366_v15, %v1289_v23 }
 0x28e   : >> { %v2363_v28 = vpop.f32.mrb[8].mxu0 }
 0x28f   : >> { %v1482_v30 = vadd.f32 %v2363_v28, %v1379_v4  ;;  %v1466_v19 = vpop.f32.mrb[9].mxu0 }
 0x290   : >> { %v1480_v31 = vadd.f32 %v1466_v19, %v1377_v24  ;;  %v2364_v32 = vpop.f32.mrb[10].mxu0  ;;  %v2387_v37 = vpop.f32.mrb[12].mxu1 }
 0x291   : >> { %v1563_v33 = vadd.f32 %v2371_v20, %v1482_v30  ;;  %v1469_v34 = vpop.f32.mrb[11].mxu0  ;;  %v1739_v39 = vpop.f32.mrb[13].mxu1 }
 0x292   : >> { %v1481_v35 = vadd.f32 %v1469_v34, %v1378_v25  ;;  %v1561_v36 = vadd.f32 %v1547_v26, %v1480_v31  ;;  %v2388_v40 = vpop.f32.mrb[14].mxu1 }
 0x293   : >> { %v1742_v42 = vpop.f32.mrb[15].mxu1 }
 0x294   : >> { %v1562_v38 = vadd.f32 %v1550_v29, %v1481_v35 }
 0x296   : >> { %v2379_v41 = vpop.f32.mrb[12].mxu0 }
 0x297   : >> { %v1652_v43 = vadd.f32 %v2379_v41, %v1563_v33  ;;  %v1636_v44 = vpop.f32.mrb[13].mxu0 }
 0x298   : >> { %v1650_v45 = vadd.f32 %v1636_v44, %v1561_v36  ;;  %v2380_v46 = vpop.f32.mrb[14].mxu0 }
 0x299   : >> { %v1755_v47 = vadd.f32 %v2387_v37, %v1652_v43  ;;  %v1639_v48 = vpop.f32.mrb[15].mxu0 }
 0x29a   : >> { %v1651_v49 = vadd.f32 %v1639_v48, %v1562_v38  ;;  %v1753_v50 = vadd.f32 %v1739_v39, %v1650_v45 }
 0x29c   : >> { %v1754_v51 = vadd.f32 %v1742_v42, %v1651_v49 }
 0x29e   : >> { %v2395_v52 = vpop.f32.mrb[16].mxu0 }
 0x29f   : >> { %v1836_v54 = vadd.f32 %v2395_v52, %v1755_v47  ;;  %v1820_v55 = vpop.f32.mrb[17].mxu0 }
 0x2a0   : >> { %v1834_v56 = vadd.f32 %v1820_v55, %v1753_v50  ;;  %v2396_v57 = vpop.f32.mrb[18].mxu0 }
 0x2a1   : >> { %v1846_v58 = vadd.f32 %v2181_v53, %v1836_v54  ;;  %v1823_v59 = vpop.f32.mrb[19].mxu0 }
 0x2a2   : >> { %v1844_v60 = vadd.f32 %v2181_v53, %v1834_v56  ;;  %v1835_v61 = vadd.f32 %v1823_v59, %v1754_v51  ;;  %1032 = sbr.rel (!%p1030_p12) target bundleno = 410 (0x19a), region = 152 }
 0x2a3   : >> { %v1849_v62 = vmax.f32 %v1846_v58, 0.0 }
 0x2a4   : >> { %v1847_v63 = vmax.f32 %v1844_v60, 0.0  ;;  %v1845_v0 = vadd.f32 %v2181_v53, %v1835_v61 }
 0x2a5   : >> { %1855 = vst.msk [vmem:[%s1851_s6 + $0x10] sm:$0xff] %vm1852_vm8, %v1849_v62 }
 0x2a6   : >> { %1853 = vst.msk [vmem:[%s1851_s6] sm:$0xff] %vm1852_vm8, %v1847_v63  ;;  %v1848_v1 = vmax.f32 %v1845_v0, 0.0 }
 0x2a8   : >> { %1854 = vst.msk [vmem:[%s1851_s6 + $0x8] sm:$0xff] %vm1852_vm8, %v1848_v1 }
 0x2a9 LB: >> { %s2183_s9 = smul.u32 48, %s2707_s7  ;;  %s2207_s27 = sshll.u32 %s2707_s7, 3  ;;  %vm1898_vm9 = vcmask 519168   ;;  %vm1900_vm10 = vcmask 517120   ;;  %s2707_s7 = sphi %s3034_s7, %s1861_s7  }
 0x2aa   : >> { %s1897_s11 = scalar_lea.vmem %s2887_s17, %s2207_s27  ;;  %s1861_s7 = sadd.s32 1, %s2707_s7  }
 0x2ab   : >> { %s1864_s10 = scalar_lea.vmem [#allocation3], %s2183_s9  ;;  %p1858_p13 = scmp.ge.s32.totalorder %s1861_s7, 12  }
 0x2af   : >> { %v1865_v2 = vld [vmem:[%s1864_s10] ss:$2 sm:$0xff]  ;;  %v2185_v3 = vld [vmem:[%s1864_s10 + $0x1] ss:$2 sm:$0xff] }
 0x2b0   : >> { %v2189_v5 = vld [vmem:[%s1864_s10 + $0x18] ss:$2 sm:$0xff]  ;;  %v2191_v6 = vld [vmem:[%s1864_s10 + $0x19] ss:$2 sm:$0xff]  ;;  %v1882_v7 = vmax.f32 %v1865_v2, %v2185_v3 }
 0x2b1   : >> { %v2184_v8 = vld [vmem:[%s1864_s10 + $0x10] ss:$2 sm:$0xf]  ;;  %v1884_v9 = vmax.f32 %v2189_v5, %v2191_v6  ;;  %v2186_v10 = vld [vmem:[%s1864_s10 + $0x11] ss:$2 sm:$0xf] }
 0x2b2   : >> { %v2190_v11 = vld [vmem:[%s1864_s10 + $0x28] ss:$2 sm:$0xf]  ;;  %v2192_v12 = vld [vmem:[%s1864_s10 + $0x29] ss:$2 sm:$0xf]  ;;  %v1883_v13 = vmax.f32 %v2184_v8, %v2186_v10 }
 0x2b3   : >> { %v1886_v14 = vmax.f32 %v1882_v7, %v1884_v9  ;;  %v1885_v15 = vmax.f32 %v2190_v11, %v2192_v12  ;;  %1860 = sbr.rel (!%p1858_p13) target bundleno = 681 (0x2a9), region = 163 }
 0x2b5   : >> { %v2205_v16 = vpack.c.bf16 %v1886_v14, %v1886_v14  ;;  %v1887_v17 = vmax.f32 %v1883_v13, %v1885_v15 }
 0x2b7   : >> { %1899 = vst.msk [vmem:[%s1897_s11] sm:$0xf] %vm1898_vm9, %v2205_v16  ;;  %v2206_v18 = vpack.c.bf16 %v1887_v17, %v1887_v17 }
 0x2b9   : >> { %1901 = vst.msk [vmem:[%s1897_s11 + $0x4] sm:$0x3] %vm1900_vm10, %v2206_v18 }
 0x2ba PF: > { %s18_s18 = sadd.s32 1, %s2695_s18  }
 0x2bb   : > { %p15_p0 = scmp.ge.s32.totalorder %s18_s18, 4  }
 0x2bd   :  { %17 = sbr.rel (!%p15_p0) target bundleno = 3 (0x3), region = 174 }
 0x2c4   :  { %1923 = vsyncpa [#allocation5], 1 }
 0x2c5   :  { %1925 = vsyncpa [#allocation5 + $0x1], 1 }
 0x2c6   :  { %1926 = vsyncpa [#allocation7], 1 }
 0x2c7   :  { %1927 = vsyncpa [#allocation10], 1 }

// kernel: net_forward.3
= control target key start
LH: loop header
LB: loop body
LE: loop exit
PB: predicated region body
PF: predicated region fallthrough
CT: control target
= control target key end

     0   :  { %10 = vsyncpa [#allocation5], 0  ;;  %s3456_s0 = inlined_call_operand.vmem [shape: bf16[16,9216], index: 0, kind: input, shape index: {}]   ;;  %s3457_s1 = inlined_call_operand.hbm [shape: bf16[9216,128], index: 1, kind: input, shape index: {}]   ;;  %s3458_s2 = inlined_call_operand.hbm [shape: f32[1,128], index: 2, kind: input, shape index: {}]   ;;  %s3459_s3 = inlined_call_operand.vmem [shape: bf16[128,10], index: 3, kind: input, shape index: {}]   ;;  %s3460_s4 = inlined_call_operand.hbm [shape: f32[1,10], index: 4, kind: input, shape index: {}]   ;;  %s3461_s5 = inlined_call_operand.vmem [shape: f32[16,10], index: 5, kind: output, shape index: {}]  }
   0x1   :  { %12 = vsyncpa [#allocation5 + $0x1], 0 }
   0x2   :  { %13 = vsyncpa [#allocation7], 0  ;;  %s3036_s18 = smov 0   ;;  %s3038_s19 = smov 0  }
   0x3   :  { %s3040_s20 = smov 0   ;;  %s3042_s21 = smov 0  }
   0x4 LB: > { %s3055_s22 = sadd.s32 4294967295, %s2996_s21   ;;  %s3058_s23 = sadd.s32 1, %s2996_s21   ;;  %s2996_s21 = sphi %s3042_s21, %s3480_s21   ;;  %s2992_s20 = sphi %s3040_s20, %s3479_s20   ;;  %s2988_s19 = sphi %s3038_s19, %s3478_s19   ;;  %s2984_s18 = sphi %s3036_s18, %s3477_s18  }
   0x5   : > { %s23_s24 = ssub.s32 %s2996_s21, %s3058_s23  ;;  %s26_s25 = sadd.s32 1, %s2992_s20 }
   0x6   : > { %p24_p0 = scmp.eq.s32.totalorder %s23_s24, 0  ;;  %p33_p1 = scmp.ne.s32.totalorder %s2992_s20, %s2988_s19 }
   0x7   : > { %p34_p2 = scmp.eq.s32.totalorder %s2996_s21, 0  ;;  %p65_p3 = scmp.ne.s32.totalorder %s2988_s19, %s2984_s18 }
   0x8   : > { %s3068_s26 = scalar_select %p24_p0, %s2992_s20, %s26_s25  }
   0x9   : > { %p3070_p4 = por %p34_p2, %p33_p1  ;;  %p3462_p5 = scmp.eq.s32.totalorder %s3055_s22, 0 }
   0xa   : > { %p2209_p6 = scmp.ge.s32.totalorder %s2996_s21, 1  ;;  %p160_p7 = scmp.lt.s32.totalorder %s2996_s21, 5 }
   0xb   : > { %s3466_s27 = scalar_select %p3070_p4, 1, 0 }
   0xc   : > { %p3079_p8 = por %p3462_p5, %p65_p3  ;;  %p3084_p10 = pnand %p2209_p6, %p160_p7 }
   0xd   : > { %s2998_s30 = smov [#allocation6]   ;;  %s2999_s7 = smov [#allocation8]  }
   0xe   : > { %s3467_s28 = scalar_select %p3079_p8, 1, 0 }
   0xf   : > { %s3468_s29 = scalar_select %p3084_p10, 1, 0 }
  0x10   : > { %s173_s6 = sshll.u32 %s2998_s30, 4  ;;  %p2637_p11 = pneg %p3084_p10  ;;  %s174_s6 = int_to_ptr.vmem [resolvable:$true] %s173_s6 }
  0x11   : > { %s187_s8 = sshll.u32 %s2999_s7, 4  ;;  %s2874_s12 = scalar_lea.hbm %s3458_s2, 16  ;;  %s3096_s8 = int_to_ptr.vmem [resolvable:$true] %s187_s8 }
  0x12   : > { %p3092_p12 = pnand %p2637_p11, %p3462_p5  ;;  %p2875_p13 = scmp.ne.s32.totalorder %s3458_s2, %s2874_s12 }
  0x13   : > { %p2881_p3 = scmp.lt.u32.totalorder %s2874_s12, %s3458_s2 }
  0x14   : > { %p2876_p0 = pneg %p3092_p12 }
  0x16   : > { %p2877_p1 = pnand %p2876_p0, %p2875_p13 }
  0x18   : > { %p2878_p2 = pneg %p2877_p1 }
  0x1a   : > { %p2883_p6 = pnand %p2881_p3, %p2878_p2 }
  0x1c   : > { %2886 = shalt.err (!%p2883_p6)
}
  0x1d   : > { %s2887_s17 = scalar_lea.vmem %s174_s6, 16  ;;  %s2894_s18 = scalar_lea.vmem %s174_s6, 32 }
  0x1e   : > { %p2888_p7 = scmp.ne.s32.totalorder %s174_s6, %s2887_s17  ;;  %p2895_p5 = scmp.lt.s32.totalorder %s174_s6, %s174_s6 }
  0x1f   : > { %p2896_p8 = scmp.lt.s32.totalorder %s2894_s18, %s2887_s17 }
  0x20   : > { %p2890_p11 = pnand %p2888_p7, %p2876_p0 }
  0x21   : > { %p2897_p10 = por %p2896_p8, %p2895_p5 }
  0x22   : > { %p2891_p9 = pneg %p2890_p11 }
  0x24   : > { %p2898_p4 = pnand %p2897_p10, %p2891_p9 }
  0x26   : > { %2901 = shalt.err (!%p2898_p4)
}
  0x27   : > { %2640 = dma.hbm_to_vmem [thread:$0]  (!%p3092_p12), %s3458_s2, 16, %s174_s6, [#allocation7]  }
  0x28   : > { %s2902_s10 = scalar_lea.hbm %s3460_s4, 16 }
  0x29   : > { %p2903_p13 = scmp.ne.s32.totalorder %s3460_s4, %s2902_s10  ;;  %p2909_p4 = scmp.lt.u32.totalorder %s2902_s10, %s3460_s4 }
  0x2b   : > { %p2905_p5 = pnand %p2903_p13, %p2876_p0 }
  0x2d   : > { %p2906_p8 = pneg %p2905_p5 }
  0x2f   : > { %p2911_p9 = pnand %p2909_p4, %p2906_p8 }
  0x31   : > { %2914 = shalt.err (!%p2911_p9)
}
  0x32   : > { %s2915_s6 = scalar_lea.vmem %s3096_s8, 16  ;;  %s2922_s15 = scalar_lea.vmem %s3096_s8, 32 }
  0x33   : > { %p2916_p10 = scmp.ne.s32.totalorder %s3096_s8, %s2915_s6  ;;  %p2923_p3 = scmp.lt.s32.totalorder %s3096_s8, %s3096_s8 }
  0x34   : > { %p2924_p6 = scmp.lt.s32.totalorder %s2922_s15, %s2915_s6 }
  0x35   : > { %p2918_p1 = pnand %p2916_p10, %p2876_p0 }
  0x36   : > { %p2925_p7 = por %p2924_p6, %p2923_p3 }
  0x37   : > { %p2919_p2 = pneg %p2918_p1 }
  0x39   : > { %p2926_p11 = pnand %p2925_p7, %p2919_p2 }
  0x3b   : > { %2929 = shalt.err (!%p2926_p11)
}
  0x3c   : > { %2643 = dma.hbm_to_vmem [thread:$0]  (!%p3092_p12), %s3460_s4, 16, %s3096_s8, [#allocation7]  }
  0x3d   : > { %p2212_p13 = scmp.ge.s32.totalorder %s2996_s21, 4 }
  0x3e   : > { %p3470_p0 = scmp.ne.s32.totalorder (!%p2212_p13), %s3466_s27, 0 }
  0x3f   : > { %194 = sbr.rel (%p2212_p13) target bundleno = 111 (0x6f), region = 28 }
  0x46   : > { %197 = sbr.rel (!%p3470_p0) target bundleno = 84 (0x54), region = 32  ;;  %s199_s18 = sand.u32 (%p3470_p0), 1, %s2992_s20  }
  0x47   : > { %s2394_s24 = smul.u32 (%p3470_p0), 72, %s2996_s21 }
  0x48   : > { %s2623_s25 = smul.u32 (%p3470_p0), 144, %s199_s18 }
  0x49   : > { %s3154_s9 = scalar_lea.vmem (%p3470_p0), %s3456_s0, %s2394_s24 }
  0x4a   : > { %v217_v0 = vld [vmem:[%s3154_s9] sm:$0xff] (%p3470_p0)  ;;  %v219_v1 = vld [vmem:[%s3154_s9 + $0x8] sm:$0xff] (%p3470_p0)  ;;  %v221_v2 = vld [vmem:[%s3154_s9 + $0x10] sm:$0xff] (%p3470_p0)  ;;  %s3159_s8 = scalar_lea.vmem (%p3470_p0), [#allocation3], %s2623_s25 }
  0x4b   : > { %218 = vst [vmem:[%s3159_s8] sm:$0xff] (%p3470_p0), %v217_v0  ;;  %220 = vst [vmem:[%s3159_s8 + $0x8] sm:$0xff] (%p3470_p0), %v219_v1  ;;  %v223_v3 = vld [vmem:[%s3154_s9 + $0x18] sm:$0xff] (%p3470_p0)  ;;  %v225_v4 = vld [vmem:[%s3154_s9 + $0x20] sm:$0xff] (%p3470_p0) }
  0x4c   : > { %222 = vst [vmem:[%s3159_s8 + $0x10] sm:$0xff] (%p3470_p0), %v221_v2  ;;  %v227_v5 = vld [vmem:[%s3154_s9 + $0x28] sm:$0xff] (%p3470_p0)  ;;  %224 = vst [vmem:[%s3159_s8 + $0x18] sm:$0xff] (%p3470_p0), %v223_v3  ;;  %v229_v6 = vld [vmem:[%s3154_s9 + $0x30] sm:$0xff] (%p3470_p0) }
  0x4d   : > { %226 = vst [vmem:[%s3159_s8 + $0x20] sm:$0xff] %v225_v4  ;;  %228 = vst [vmem:[%s3159_s8 + $0x28] sm:$0xff] %v227_v5  ;;  %v231_v7 = vld [vmem:[%s3154_s9 + $0x38] sm:$0xff]  ;;  %v233_v8 = vld [vmem:[%s3154_s9 + $0x40] sm:$0xff] }
  0x4e   : > { %230 = vst [vmem:[%s3159_s8 + $0x30] sm:$0xff] %v229_v6  ;;  %232 = vst [vmem:[%s3159_s8 + $0x38] sm:$0xff] %v231_v7  ;;  %v235_v9 = vld [vmem:[%s3154_s9 + $0x120] sm:$0xff]  ;;  %v237_v10 = vld [vmem:[%s3154_s9 + $0x128] sm:$0xff] }
  0x4f   : > { %234 = vst [vmem:[%s3159_s8 + $0x40] sm:$0xff] %v233_v8  ;;  %v239_v11 = vld [vmem:[%s3154_s9 + $0x130] sm:$0xff]  ;;  %236 = vst [vmem:[%s3159_s8 + $0x48] sm:$0xff] %v235_v9  ;;  %v241_v12 = vld [vmem:[%s3154_s9 + $0x138] sm:$0xff] }
  0x50   : > { %238 = vst [vmem:[%s3159_s8 + $0x50] sm:$0xff] %v237_v10  ;;  %240 = vst [vmem:[%s3159_s8 + $0x58] sm:$0xff] %v239_v11  ;;  %v243_v13 = vld [vmem:[%s3154_s9 + $0x140] sm:$0xff]  ;;  %v245_v14 = vld [vmem:[%s3154_s9 + $0x148] sm:$0xff] }
  0x51   : > { %242 = vst [vmem:[%s3159_s8 + $0x60] sm:$0xff] %v241_v12  ;;  %244 = vst [vmem:[%s3159_s8 + $0x68] sm:$0xff] %v243_v13  ;;  %v247_v15 = vld [vmem:[%s3154_s9 + $0x150] sm:$0xff]  ;;  %v249_v16 = vld [vmem:[%s3154_s9 + $0x158] sm:$0xff] }
  0x52   : > { %246 = vst [vmem:[%s3159_s8 + $0x70] sm:$0xff] %v245_v14  ;;  %v251_v17 = vld [vmem:[%s3154_s9 + $0x160] sm:$0xff]  ;;  %248 = vst [vmem:[%s3159_s8 + $0x78] sm:$0xff] %v247_v15 }
  0x53   : > { %250 = vst [vmem:[%s3159_s8 + $0x80] sm:$0xff] %v249_v16  ;;  %252 = vst [vmem:[%s3159_s8 + $0x88] sm:$0xff] %v251_v17 }
  0x54 PF: > { %s259_s10 = sand.u32 1, %s2992_s20   ;;  %s2395_s11 = smul.u32 18432, %s2996_s21 }
  0x55   : > { %s2624_s12 = smul.u32 1152, %s259_s10  ;;  %s3203_s17 = scalar_lea.sflag [#allocation5], %s259_s10 }
  0x56   : > { %s3199_s6 = scalar_lea.hbm %s3457_s1, %s2395_s11  ;;  %p3471_p5 = scmp.ne.s32.totalorder %s3466_s27, 0 }
  0x57   : > { %s263_s15 = scalar_lea.vmem [#allocation4], %s2624_s12  ;;  %s2930_s18 = scalar_lea.hbm %s3199_s6, 18432 }
  0x58   : > { %s270_s16 = sshll.u32 %s263_s15, 4  ;;  %p2931_p12 = scmp.ne.s32.totalorder %s3199_s6, %s2930_s18  ;;  %s3201_s16 = int_to_ptr.vmem [resolvable:$true] %s270_s16 }
  0x59   : > { %s2934_s25 = scalar_lea.hbm %s3457_s1, 73728  ;;  %p2935_p9 = scmp.lt.u32.totalorder %s3199_s6, %s3457_s1 }
  0x5a   : > { %p2932_p8 = pnand %p2931_p12, %p3471_p5  ;;  %p2936_p10 = scmp.lt.u32.totalorder %s2934_s25, %s2930_s18 }
  0x5b   : > { %p2938_p2 = scmp.lt.u32.totalorder %s2930_s18, %s3199_s6 }
  0x5c   : > { %p2933_p4 = pneg %p2932_p8  ;;  %p2937_p1 = por %p2936_p10, %p2935_p9 }
  0x5e   : > { %p2939_p3 = por %p2938_p2, %p2937_p1 }
  0x60   : > { %p2940_p6 = pnand %p2939_p3, %p2933_p4 }
  0x62   : > { %2943 = shalt.err (!%p2940_p6)
}
  0x63   : > { %s2944_s9 = scalar_lea.vmem %s3201_s16, 18432  ;;  %s3000_s8 = smov [#allocation4]  }
  0x64   : > { %p2945_p7 = scmp.ne.s32.totalorder %s3201_s16, %s2944_s9  ;;  %s2948_s10 = sshll.u32 %s3000_s8, 4  ;;  %s2949_s10 = int_to_ptr.vmem [resolvable:$false] %s2948_s10 }
  0x65   : > { %s2950_s11 = scalar_lea.vmem %s2949_s10, 36864  ;;  %p2951_p0 = scmp.lt.s32.totalorder %s3201_s16, %s2949_s10 }
  0x66   : > { %p2946_p11 = pnand %p2945_p7, %p3471_p5  ;;  %p2952_p12 = scmp.lt.s32.totalorder %s2950_s11, %s2944_s9 }
  0x68   : > { %p2947_p13 = pneg %p2946_p11  ;;  %p2953_p8 = por %p2952_p12, %p2951_p0 }
  0x6a   : > { %p2954_p9 = pnand %p2953_p8, %p2947_p13 }
  0x6c   : > { %2957 = shalt.err (!%p2954_p9)
}
  0x6d   : > { %s3001_s12 = smov 64   ;;  %s3002_s13 = smov 4  }
  0x6e   : > { %2631 = dma.hbm_to_vmem [thread:$0]  (%p3471_p5), %s3199_s6, 18432, %s3201_s16, %s3203_s17, %s3001_s12, %s3001_s12, %s3002_s13  }
  0x6f PF: > { %p3472_p4 = scmp.ne.s32.totalorder %s3468_s29, 0 }
  0x70   : > { %s285_s14 = sand.u32 (!%p3472_p4), 1, %s2988_s19   ;;  %p3473_p10 = scmp.ne.s32.totalorder (!%p3472_p4), %s3467_s28, 0 }
  0x71   : > { %282 = sbr.rel (%p3472_p4) target bundleno = 1067 (0x42b), region = 59  ;;  %s292_s24 = scalar_lea.sflag (!%p3472_p4), [#allocation5], %s285_s14 }
  0x72   : > { %s2625_s15 = smul.u32 (!%p3472_p4), 144, %s285_s14 }
  0x73   : > { %s2626_s18 = smul.u32 (!%p3472_p4), 1152, %s285_s14 }
  0x74   : > { %s3230_s21 = scalar_lea.vmem (!%p3472_p4), [#allocation3], %s2625_s15 }
  0x75   : > { %s3232_s25 = scalar_lea.vmem (!%p3472_p4), [#allocation4], %s2626_s18 }
  0x78   : > { %2975 = dma.done.wait (%p3473_p10), %s292_s24, 18432  }
  0x79   : > { %2977 = vsyncadd (%p3473_p10), %s292_s24, 4294948864  ;;  %p3474_p5 = scmp.eq.s32.totalorder %s3055_s22, 0 }
  0x7b   : > { %2979 = dma.done.wait (%p3474_p5), [#allocation7], 32   ;;  %p3475_p1 = pmov %p3474_p5 }
  0x7c   : > { %p3476_p2 = scmp.ne.s32.totalorder %s3055_s22, 0 }
  0x7d   : > { %2981 = vsyncadd (%p3475_p1), [#allocation7], 4294967264  ;;  %v3003_v18 = vmov (!%p3476_p2), 0.0  }
  0x7e   : > { %335 = sbr.rel (%p3476_p2) target bundleno = 133 (0x85), region = 79  ;;  %336 = vst [vmem:[#allocation2] sm:$0xff] (!%p3476_p2), %v3003_v18  ;;  %337 = vst [vmem:[#allocation2 + $0x8] sm:$0xff] (!%p3476_p2), %v3003_v18 }
  0x85 PF: > { %v2687_v19 = vld [vmem:[%s3232_s25 + $0x40] sm:$0xff]   ;;  %v2691_v23 = vld [vmem:[%s3232_s25 + $0x48] sm:$0xff]   ;;  %v2695_v27 = vld [vmem:[%s3232_s25 + $0x50] sm:$0xff]   ;;  %p2381_p3 = scmp.ne.s32.totalorder %s3055_s22, 3 }
  0x86   : > { %v2688_v20 = vld [vmem:[%s3232_s25 + $0xc0] sm:$0xff]   ;;  %2396 = vmatprep.subr.bf16.mxu0 %v2687_v19  ;;  %v2692_v24 = vld [vmem:[%s3232_s25 + $0xc8] sm:$0xff]   ;;  %v2696_v28 = vld [vmem:[%s3232_s25 + $0xd0] sm:$0xff]   ;;  %vm3005_vm0 = vmmov (!%p2381_p3), 0   ;;  %vm2103_vm1 = vcmask (!%p2381_p3), 80896  }
  0x87   : > { %v2689_v21 = vld [vmem:[%s3232_s25] sm:$0xff]   ;;  %2418 = vmatprep.subr.bf16.mxu1 %v2688_v20  ;;  %v2693_v25 = vld [vmem:[%s3232_s25 + $0x8] sm:$0xff]   ;;  %v2697_v29 = vld [vmem:[%s3232_s25 + $0x10] sm:$0xff]  }
  0x88   : > { %v2690_v22 = vld [vmem:[%s3232_s25 + $0x80] sm:$0xff]   ;;  %2397 = vmatpush3.bf16.msra.mxu0 %v2689_v21  ;;  %v2694_v26 = vld [vmem:[%s3232_s25 + $0x88] sm:$0xff]   ;;  %v2698_v30 = vld [vmem:[%s3232_s25 + $0x90] sm:$0xff]  }
  0x89   : > { %2419 = vmatpush3.bf16.msra.mxu1 %v2690_v22  ;;  %2398 = vmatprep.subr.bf16.mxu0 %v2691_v23  ;;  %v2699_v31 = vld [vmem:[%s3232_s25 + $0x58] sm:$0xff]   ;;  %v2703_v35 = vld [vmem:[%s3232_s25 + $0x60] sm:$0xff]   ;;  %v2707_v39 = vld [vmem:[%s3232_s25 + $0x68] sm:$0xff]  }
  0x8a   : > { %2420 = vmatprep.subr.bf16.mxu1 %v2692_v24  ;;  %v2700_v32 = vld [vmem:[%s3232_s25 + $0xd8] sm:$0xff]   ;;  %v2704_v36 = vld [vmem:[%s3232_s25 + $0xe0] sm:$0xff]   ;;  %v2708_v40 = vld [vmem:[%s3232_s25 + $0xe8] sm:$0xff]  }
  0x8b   : > { %v2701_v33 = vld [vmem:[%s3232_s25 + $0x18] sm:$0xff]   ;;  %v2705_v37 = vld [vmem:[%s3232_s25 + $0x20] sm:$0xff]   ;;  %v2709_v41 = vld [vmem:[%s3232_s25 + $0x28] sm:$0xff]  }
  0x8c   : > { %2399 = vmatpush3.bf16.msra.mxu0 %v2693_v25  ;;  %v2702_v34 = vld [vmem:[%s3232_s25 + $0x98] sm:$0xff]   ;;  %v2706_v38 = vld [vmem:[%s3232_s25 + $0xa0] sm:$0xff]   ;;  %v2710_v42 = vld [vmem:[%s3232_s25 + $0xa8] sm:$0xff]  }
  0x8d   : > { %2421 = vmatpush3.bf16.msra.mxu1 %v2694_v26  ;;  %2400 = vmatprep.subr.bf16.mxu0 %v2695_v27  ;;  %v2711_v43 = vld [vmem:[%s3232_s25 + $0x70] sm:$0xff]   ;;  %v2715_v47 = vld [vmem:[%s3232_s25 + $0x78] sm:$0xff]   ;;  %v2725_v55 = vld [vmem:[%s3232_s25 + $0x140] sm:$0xff]  }
  0x8e   : > { %2422 = vmatprep.subr.bf16.mxu1 %v2696_v28  ;;  %v2712_v44 = vld [vmem:[%s3232_s25 + $0xf0] sm:$0xff]   ;;  %v2716_v48 = vld [vmem:[%s3232_s25 + $0xf8] sm:$0xff]   ;;  %v2726_v56 = vld [vmem:[%s3232_s25 + $0x100] sm:$0xff]  }
  0x8f   : > { %v2713_v45 = vld [vmem:[%s3232_s25 + $0x30] sm:$0xff]   ;;  %v2717_v49 = vld [vmem:[%s3232_s25 + $0x38] sm:$0xff]   ;;  %v2727_v57 = vld [vmem:[%s3232_s25 + $0x1c0] sm:$0xff]  }
  0x90   : > { %2401 = vmatpush3.bf16.msra.mxu0 %v2697_v29  ;;  %v2714_v46 = vld [vmem:[%s3232_s25 + $0xb0] sm:$0xff]   ;;  %v2718_v50 = vld [vmem:[%s3232_s25 + $0xb8] sm:$0xff]   ;;  %v2728_v58 = vld [vmem:[%s3232_s25 + $0x180] sm:$0xff]  }
  0x91   : > { %2423 = vmatpush3.bf16.msra.mxu1 %v2698_v30  ;;  %2402 = vmatprep.subr.bf16.mxu0 %v2699_v31  ;;  %v2719_v51 = vld [vmem:[%s3230_s21] ss:$72 sps:$4 sm:$0xff]   ;;  %v2721_v52 = vld [vmem:[%s3230_s21 + $0x4] ss:$72 sps:$4 sm:$0xff]   ;;  %v2756_v22 = vld [vmem:[%s3230_s21 + $0x10] ss:$72 sps:$4 sm:$0xff]  }
  0x92   : > { %2424 = vmatprep.subr.bf16.mxu1 %v2700_v32  ;;  %v2722_v53 = vld [vmem:[%s3230_s21 + $0x8] ss:$72 sps:$4 sm:$0xff]   ;;  %v2724_v54 = vld [vmem:[%s3230_s21 + $0xc] ss:$72 sps:$4 sm:$0xff]   ;;  %1632 = vmatprep.mubr.bf16.mxu0 %v2721_v52  ;;  %v2761_v26 = vld [vmem:[%s3230_s21 + $0x18] ss:$72 sps:$4 sm:$0xff]  }
  0x93   : > { %1673 = vmatprep.mubr.bf16.mxu1 %v2724_v54  ;;  %v2729_v59 = vld [vmem:[%s3232_s25 + $0x148] sm:$0xff]   ;;  %v2733_v63 = vld [vmem:[%s3232_s25 + $0x150] sm:$0xff]   ;;  %v2737_v3 = vld [vmem:[%s3232_s25 + $0x158] sm:$0xff]  }
  0x94   : > { %2403 = vmatpush3.bf16.msra.mxu0 %v2701_v33  ;;  %v2730_v60 = vld [vmem:[%s3232_s25 + $0x108] sm:$0xff]   ;;  %v2734_v0 = vld [vmem:[%s3232_s25 + $0x110] sm:$0xff]   ;;  %v2738_v4 = vld [vmem:[%s3232_s25 + $0x118] sm:$0xff]  }
  0x95   : > { %2425 = vmatpush3.bf16.msra.mxu1 %v2702_v34  ;;  %2404 = vmatprep.subr.bf16.mxu0 %v2703_v35  ;;  %v2731_v61 = vld [vmem:[%s3232_s25 + $0x1c8] sm:$0xff]   ;;  %v2735_v1 = vld [vmem:[%s3232_s25 + $0x1d0] sm:$0xff]   ;;  %v2739_v5 = vld [vmem:[%s3232_s25 + $0x1d8] sm:$0xff]  }
  0x96   : > { %2426 = vmatprep.subr.bf16.mxu1 %v2704_v36  ;;  %v2732_v62 = vld [vmem:[%s3232_s25 + $0x188] sm:$0xff]   ;;  %v2736_v2 = vld [vmem:[%s3232_s25 + $0x190] sm:$0xff]   ;;  %v2740_v6 = vld [vmem:[%s3232_s25 + $0x198] sm:$0xff]  }
  0x97   : > { %v2741_v7 = vld [vmem:[%s3232_s25 + $0x160] sm:$0xff]   ;;  %v2745_v11 = vld [vmem:[%s3232_s25 + $0x168] sm:$0xff]   ;;  %v2749_v15 = vld [vmem:[%s3232_s25 + $0x170] sm:$0xff]  }
  0x98   : > { %2405 = vmatpush3.bf16.msra.mxu0 %v2705_v37  ;;  %v2742_v8 = vld [vmem:[%s3232_s25 + $0x120] sm:$0xff]   ;;  %v2746_v12 = vld [vmem:[%s3232_s25 + $0x128] sm:$0xff]   ;;  %v2750_v16 = vld [vmem:[%s3232_s25 + $0x130] sm:$0xff]  }
  0x99   : > { %2427 = vmatpush3.bf16.msra.mxu1 %v2706_v38  ;;  %2406 = vmatprep.subr.bf16.mxu0 %v2707_v39  ;;  %v2743_v9 = vld [vmem:[%s3232_s25 + $0x1e0] sm:$0xff]   ;;  %v2747_v13 = vld [vmem:[%s3232_s25 + $0x1e8] sm:$0xff]   ;;  %v2751_v17 = vld [vmem:[%s3232_s25 + $0x1f0] sm:$0xff]  }
  0x9a   : > { %2428 = vmatprep.subr.bf16.mxu1 %v2708_v40  ;;  %v2744_v10 = vld [vmem:[%s3232_s25 + $0x1a0] sm:$0xff]   ;;  %v2748_v14 = vld [vmem:[%s3232_s25 + $0x1a8] sm:$0xff]   ;;  %v2752_v18 = vld [vmem:[%s3232_s25 + $0x1b0] sm:$0xff]  }
  0x9b   : > { %v2753_v19 = vld [vmem:[%s3232_s25 + $0x178] sm:$0xff]   ;;  %v2760_v25 = vld [vmem:[%s3232_s25 + $0x240] sm:$0xff]   ;;  %v2767_v31 = vld [vmem:[%s3232_s25 + $0x248] sm:$0xff]  }
  0x9c   : > { %2407 = vmatpush3.bf16.msra.mxu0 %v2709_v41  ;;  %v2754_v20 = vld [vmem:[%s3232_s25 + $0x138] sm:$0xff]   ;;  %v2764_v28 = vld [vmem:[%s3232_s25 + $0x200] sm:$0xff]   ;;  %v2768_v32 = vld [vmem:[%s3232_s25 + $0x208] sm:$0xff]  }
  0x9d   : > { %2429 = vmatpush3.bf16.msra.mxu1 %v2710_v42  ;;  %2408 = vmatprep.subr.bf16.mxu0 %v2711_v43  ;;  %v2755_v21 = vld [vmem:[%s3232_s25 + $0x1f8] sm:$0xff]   ;;  %v2765_v29 = vld [vmem:[%s3232_s25 + $0x2c0] sm:$0xff]   ;;  %v2769_v33 = vld [vmem:[%s3232_s25 + $0x2c8] sm:$0xff]  }
  0x9e   : > { %2430 = vmatprep.subr.bf16.mxu1 %v2712_v44  ;;  %v2758_v23 = vld [vmem:[%s3230_s21 + $0x14] ss:$72 sps:$4 sm:$0xff]  }
  0x9f   : > { %v2759_v24 = vld [vmem:[%s3232_s25 + $0x1b8] sm:$0xff]   ;;  %v2766_v30 = vld [vmem:[%s3232_s25 + $0x280] sm:$0xff]   ;;  %v2770_v34 = vld [vmem:[%s3232_s25 + $0x288] sm:$0xff]  }
  0xa0   : > { %2409 = vmatpush3.bf16.msra.mxu0 %v2713_v45  ;;  %v2763_v27 = vld [vmem:[%s3230_s21 + $0x1c] ss:$72 sps:$4 sm:$0xff]  }
  0xa1   : > { %2431 = vmatpush3.bf16.msra.mxu1 %v2714_v46  ;;  %2410 = vmatprep.subr.bf16.mxu0 %v2715_v47  ;;  %v2771_v35 = vld [vmem:[%s3232_s25 + $0x250] sm:$0xff]   ;;  %v2775_v39 = vld [vmem:[%s3232_s25 + $0x258] sm:$0xff]   ;;  %v2779_v43 = vld [vmem:[%s3232_s25 + $0x260] sm:$0xff]  }
  0xa2   : > { %2432 = vmatprep.subr.bf16.mxu1 %v2716_v48  ;;  %v2772_v36 = vld [vmem:[%s3232_s25 + $0x210] sm:$0xff]   ;;  %v2776_v40 = vld [vmem:[%s3232_s25 + $0x218] sm:$0xff]   ;;  %v2780_v44 = vld [vmem:[%s3232_s25 + $0x220] sm:$0xff]  }
  0xa3   : > { %v2773_v37 = vld [vmem:[%s3232_s25 + $0x2d0] sm:$0xff]   ;;  %v2777_v41 = vld [vmem:[%s3232_s25 + $0x2d8] sm:$0xff]   ;;  %v2781_v45 = vld [vmem:[%s3232_s25 + $0x2e0] sm:$0xff]  }
  0xa4   : > { %2411 = vmatpush3.bf16.msra.mxu0 %v2717_v49  ;;  %v2774_v38 = vld [vmem:[%s3232_s25 + $0x290] sm:$0xff]   ;;  %v2778_v42 = vld [vmem:[%s3232_s25 + $0x298] sm:$0xff]   ;;  %v2782_v46 = vld [vmem:[%s3232_s25 + $0x2a0] sm:$0xff]  }
  0xa5   : > { %2433 = vmatpush3.bf16.msra.mxu1 %v2718_v50  ;;  %2440 = vmatprep.subr.bf16.mxu0 %v2725_v55  ;;  %v2783_v47 = vld [vmem:[%s3232_s25 + $0x268] sm:$0xff]   ;;  %v2788_v52 = vld [vmem:[%s3232_s25 + $0x230] sm:$0xff]   ;;  %v2791_v55 = vld [vmem:[%s3232_s25 + $0x278] sm:$0xff]  }
  0xa6   : > { %2462 = vmatprep.subr.bf16.mxu1 %v2727_v57  ;;  %v2784_v48 = vld [vmem:[%s3232_s25 + $0x228] sm:$0xff]   ;;  %v2790_v54 = vld [vmem:[%s3232_s25 + $0x2b0] sm:$0xff]   ;;  %v2793_v57 = vld [vmem:[%s3232_s25 + $0x2f8] sm:$0xff]  }
  0xa7   : > { %1633 = vmatmul.mubr.bf16.vlgmr.msra.gmra.mrb[0].mxu0 %v2719_v51  ;;  %v2785_v49 = vld [vmem:[%s3232_s25 + $0x2e8] sm:$0xff]   ;;  %v2787_v51 = vld [vmem:[%s3232_s25 + $0x270] sm:$0xff]  }
  0xa8   : > { %1674 = vmatmul.mubr.bf16.vlgmr.msra.gmra.mrb[0].mxu1 %v2722_v53  ;;  %2441 = vmatpush3.bf16.msra.mxu0 %v2726_v56  ;;  %v2786_v50 = vld [vmem:[%s3232_s25 + $0x2a8] sm:$0xff]   ;;  %v2789_v53 = vld [vmem:[%s3232_s25 + $0x2f0] sm:$0xff]   ;;  %v2792_v56 = vld [vmem:[%s3232_s25 + $0x238] sm:$0xff]  }
  0xa9   : > { %2463 = vmatpush3.bf16.msra.mxu1 %v2728_v58  ;;  %2442 = vmatprep.subr.bf16.mxu0 %v2729_v59  ;;  %v2794_v58 = vld [vmem:[%s3230_s21 + $0x20] ss:$72 sps:$4 sm:$0xff]   ;;  %v2796_v59 = vld [vmem:[%s3230_s21 + $0x24] ss:$72 sps:$4 sm:$0xff]  }
  0xaa   : > { %2464 = vmatprep.subr.bf16.mxu1 %v2731_v61  ;;  %1714 = vmatprep.mubr.bf16.mxu0 %v2758_v23  ;;  %v2798_v61 = vld [vmem:[%s3232_s25 + $0x340] sm:$0xff]   ;;  %v2825_v23 = vld [vmem:[%s3232_s25 + $0x370] sm:$0xff]  }
  0xab   : > { %1755 = vmatprep.mubr.bf16.mxu1 %v2763_v27  ;;  %v2829_v27 = vld [vmem:[%s3232_s25 + $0x378] sm:$0xff]  }
  0xac   : > { %2443 = vmatpush3.bf16.msra.mxu0 %v2730_v60  ;;  %v2797_v60 = vld [vmem:[%s3232_s25 + $0x2b8] sm:$0xff]  }
  0xad   : > { %2465 = vmatpush3.bf16.msra.mxu1 %v2732_v62  ;;  %2444 = vmatprep.subr.bf16.mxu0 %v2733_v63  ;;  %v2799_v62 = vld [vmem:[%s3230_s21 + $0x28] ss:$72 sps:$4 sm:$0xff]   ;;  %v2801_v63 = vld [vmem:[%s3230_s21 + $0x2c] ss:$72 sps:$4 sm:$0xff]  }
  0xae   : > { %2466 = vmatprep.subr.bf16.mxu1 %v2735_v1  ;;  %v2803_v1 = vld [vmem:[%s3232_s25 + $0x3c0] sm:$0xff]  }
  0xb0   : > { %2445 = vmatpush3.bf16.msra.mxu0 %v2734_v0  ;;  %v2802_v0 = vld [vmem:[%s3232_s25 + $0x300] sm:$0xff]  }
  0xb1   : > { %2467 = vmatpush3.bf16.msra.mxu1 %v2736_v2  ;;  %2446 = vmatprep.subr.bf16.mxu0 %v2737_v3  ;;  %v2804_v2 = vld [vmem:[%s3232_s25 + $0x380] sm:$0xff]   ;;  %v2805_v3 = vld [vmem:[%s3232_s25 + $0x348] sm:$0xff]  }
  0xb2   : > { %2468 = vmatprep.subr.bf16.mxu1 %v2739_v5  ;;  %v2807_v5 = vld [vmem:[%s3232_s25 + $0x3c8] sm:$0xff]  }
  0xb4   : > { %2447 = vmatpush3.bf16.msra.mxu0 %v2738_v4  ;;  %v2806_v4 = vld [vmem:[%s3232_s25 + $0x308] sm:$0xff]  }
  0xb5   : > { %2469 = vmatpush3.bf16.msra.mxu1 %v2740_v6  ;;  %2448 = vmatprep.subr.bf16.mxu0 %v2741_v7  ;;  %v2808_v6 = vld [vmem:[%s3232_s25 + $0x388] sm:$0xff]   ;;  %v2809_v7 = vld [vmem:[%s3232_s25 + $0x350] sm:$0xff]  }
  0xb6   : > { %2470 = vmatprep.subr.bf16.mxu1 %v2743_v9  ;;  %v2811_v9 = vld [vmem:[%s3232_s25 + $0x3d0] sm:$0xff]  }
  0xb8   : > { %2449 = vmatpush3.bf16.msra.mxu0 %v2742_v8  ;;  %v2810_v8 = vld [vmem:[%s3232_s25 + $0x310] sm:$0xff]  }
  0xb9   : > { %2471 = vmatpush3.bf16.msra.mxu1 %v2744_v10  ;;  %2450 = vmatprep.subr.bf16.mxu0 %v2745_v11  ;;  %v2812_v10 = vld [vmem:[%s3232_s25 + $0x390] sm:$0xff]   ;;  %v2813_v11 = vld [vmem:[%s3232_s25 + $0x358] sm:$0xff]  }
  0xba   : > { %2472 = vmatprep.subr.bf16.mxu1 %v2747_v13  ;;  %v2815_v13 = vld [vmem:[%s3232_s25 + $0x3d8] sm:$0xff]  }
  0xbc   : > { %2451 = vmatpush3.bf16.msra.mxu0 %v2746_v12  ;;  %v2814_v12 = vld [vmem:[%s3232_s25 + $0x318] sm:$0xff]  }
  0xbd   : > { %2473 = vmatpush3.bf16.msra.mxu1 %v2748_v14  ;;  %2452 = vmatprep.subr.bf16.mxu0 %v2749_v15  ;;  %v2816_v14 = vld [vmem:[%s3232_s25 + $0x398] sm:$0xff]   ;;  %v2817_v15 = vld [vmem:[%s3232_s25 + $0x360] sm:$0xff]  }
  0xbe   : > { %2474 = vmatprep.subr.bf16.mxu1 %v2751_v17  ;;  %v2819_v17 = vld [vmem:[%s3232_s25 + $0x3e0] sm:$0xff]  }
  0xc0   : > { %2453 = vmatpush3.bf16.msra.mxu0 %v2750_v16  ;;  %v2818_v16 = vld [vmem:[%s3232_s25 + $0x320] sm:$0xff]  }
  0xc1   : > { %2475 = vmatpush3.bf16.msra.mxu1 %v2752_v18  ;;  %2454 = vmatprep.subr.bf16.mxu0 %v2753_v19  ;;  %v2820_v18 = vld [vmem:[%s3232_s25 + $0x3a0] sm:$0xff]   ;;  %v2821_v19 = vld [vmem:[%s3232_s25 + $0x368] sm:$0xff]  }
  0xc2   : > { %2476 = vmatprep.subr.bf16.mxu1 %v2755_v21  ;;  %v2823_v21 = vld [vmem:[%s3232_s25 + $0x3e8] sm:$0xff]  }
  0xc4   : > { %2455 = vmatpush3.bf16.msra.mxu0 %v2754_v20  ;;  %v2822_v20 = vld [vmem:[%s3232_s25 + $0x328] sm:$0xff]  }
  0xc5   : > { %2477 = vmatpush3.bf16.msra.mxu1 %v2759_v24  ;;  %2484 = vmatprep.subr.bf16.mxu0 %v2760_v25  ;;  %v2826_v24 = vld [vmem:[%s3232_s25 + $0x330] sm:$0xff]  }
  0xc6   : > { %2506 = vmatprep.subr.bf16.mxu1 %v2765_v29  ;;  %v2827_v25 = vld [vmem:[%s3232_s25 + $0x3f0] sm:$0xff]   ;;  %v2831_v29 = vld [vmem:[%s3232_s25 + $0x3f8] sm:$0xff]  }
  0xc7   : > { %1715 = vmatmul.mubr.bf16.vlgmr.msra.gmra.mrb[4].mxu0 %v2756_v22  ;;  %v2824_v22 = vld [vmem:[%s3232_s25 + $0x3a8] sm:$0xff]  }
  0xc8   : > { %2485 = vmatpush3.bf16.msra.mxu0 %v2764_v28  ;;  %1756 = vmatmul.mubr.bf16.vlgmr.msra.gmra.mrb[4].mxu1 %v2761_v26  ;;  %v2828_v26 = vld [vmem:[%s3232_s25 + $0x3b0] sm:$0xff]   ;;  %v2830_v28 = vld [vmem:[%s3232_s25 + $0x338] sm:$0xff]  }
  0xc9   : > { %2507 = vmatpush3.bf16.msra.mxu1 %v2766_v30  ;;  %2486 = vmatprep.subr.bf16.mxu0 %v2767_v31  ;;  %v2832_v30 = vld [vmem:[%s3230_s21 + $0x30] ss:$72 sps:$4 sm:$0xff]   ;;  %v2834_v31 = vld [vmem:[%s3230_s21 + $0x34] ss:$72 sps:$4 sm:$0xff]  }
  0xca   : > { %2508 = vmatprep.subr.bf16.mxu1 %v2769_v33  ;;  %1796 = vmatprep.mubr.bf16.mxu0 %v2796_v59  ;;  %v2836_v33 = vld [vmem:[%s3232_s25 + $0x440] sm:$0xff]  }
  0xcb   : > { %1837 = vmatprep.mubr.bf16.mxu1 %v2801_v63 }
  0xcc   : > { %2487 = vmatpush3.bf16.msra.mxu0 %v2768_v32  ;;  %v2835_v32 = vld [vmem:[%s3232_s25 + $0x3b8] sm:$0xff]  }
  0xcd   : > { %2509 = vmatpush3.bf16.msra.mxu1 %v2770_v34  ;;  %2488 = vmatprep.subr.bf16.mxu0 %v2771_v35  ;;  %v2837_v34 = vld [vmem:[%s3230_s21 + $0x38] ss:$72 sps:$4 sm:$0xff]   ;;  %v2839_v35 = vld [vmem:[%s3230_s21 + $0x3c] ss:$72 sps:$4 sm:$0xff]  }
  0xce   : > { %2510 = vmatprep.subr.bf16.mxu1 %v2773_v37  ;;  %v2841_v37 = vld [vmem:[%s3232_s25 + $0x448] sm:$0xff]  }
  0xd0   : > { %2489 = vmatpush3.bf16.msra.mxu0 %v2772_v36  ;;  %v2840_v36 = vld [vmem:[%s3232_s25 + $0x400] sm:$0xff]  }
  0xd1   : > { %2511 = vmatpush3.bf16.msra.mxu1 %v2774_v38  ;;  %2490 = vmatprep.subr.bf16.mxu0 %v2775_v39  ;;  %v2842_v38 = vld [vmem:[%s3232_s25 + $0x408] sm:$0xff]   ;;  %v2843_v39 = vld [vmem:[%s3232_s25 + $0x450] sm:$0xff]  }
  0xd2   : > { %2512 = vmatprep.subr.bf16.mxu1 %v2777_v41  ;;  %v2845_v41 = vld [vmem:[%s3232_s25 + $0x458] sm:$0xff]  }
  0xd4   : > { %2491 = vmatpush3.bf16.msra.mxu0 %v2776_v40  ;;  %v2844_v40 = vld [vmem:[%s3232_s25 + $0x410] sm:$0xff]  }
  0xd5   : > { %2513 = vmatpush3.bf16.msra.mxu1 %v2778_v42  ;;  %2492 = vmatprep.subr.bf16.mxu0 %v2779_v43  ;;  %v2846_v42 = vld [vmem:[%s3232_s25 + $0x418] sm:$0xff]   ;;  %v2847_v43 = vld [vmem:[%s3232_s25 + $0x460] sm:$0xff]  }
  0xd6   : > { %2514 = vmatprep.subr.bf16.mxu1 %v2781_v45  ;;  %v2849_v45 = vld [vmem:[%s3232_s25 + $0x468] sm:$0xff]  }
  0xd8   : > { %2493 = vmatpush3.bf16.msra.mxu0 %v2780_v44  ;;  %v2848_v44 = vld [vmem:[%s3232_s25 + $0x420] sm:$0xff]  }
  0xd9   : > { %2515 = vmatpush3.bf16.msra.mxu1 %v2782_v46  ;;  %2494 = vmatprep.subr.bf16.mxu0 %v2783_v47  ;;  %v2857_v46 = vld [vmem:[%s3230_s21 + $0x44] ss:$72 sps:$4 sm:$0xff]  }
  0xda   : > { %2516 = vmatprep.subr.bf16.mxu1 %v2785_v49  ;;  %v2850_v47 = vld [vmem:[%s3232_s25 + $0x428] sm:$0xff]   ;;  %v2852_v49 = vld [vmem:[%s3232_s25 + $0x430] sm:$0xff]  }
  0xdc   : > { %2495 = vmatpush3.bf16.msra.mxu0 %v2784_v48  ;;  %v2851_v48 = vld [vmem:[%s3232_s25 + $0x470] sm:$0xff]  }
  0xdd   : > { %2517 = vmatpush3.bf16.msra.mxu1 %v2786_v50  ;;  %2496 = vmatprep.subr.bf16.mxu0 %v2787_v51  ;;  %v2853_v50 = vld [vmem:[%s3232_s25 + $0x478] sm:$0xff]  }
  0xde   : > { %2518 = vmatprep.subr.bf16.mxu1 %v2789_v53  ;;  %v2854_v51 = vld [vmem:[%s3232_s25 + $0x438] sm:$0xff]  }
  0xe0   : > { %2497 = vmatpush3.bf16.msra.mxu0 %v2788_v52  ;;  %v2855_v52 = vld [vmem:[%s3230_s21 + $0x40] ss:$72 sps:$4 sm:$0xff]  }
  0xe1   : > { %2519 = vmatpush3.bf16.msra.mxu1 %v2790_v54  ;;  %2498 = vmatprep.subr.bf16.mxu0 %v2791_v55 }
  0xe2   : > { %2520 = vmatprep.subr.bf16.mxu1 %v2793_v57 }
  0xe4   : > { %2499 = vmatpush3.bf16.msra.mxu0 %v2792_v56 }
  0xe5   : > { %2521 = vmatpush3.bf16.msra.mxu1 %v2797_v60  ;;  %2528 = vmatprep.subr.bf16.mxu0 %v2798_v61 }
  0xe6   : > { %2550 = vmatprep.subr.bf16.mxu1 %v2803_v1 }
  0xe7   : > { %1797 = vmatmul.mubr.bf16.vlgmr.msra.gmra.mrb[8].mxu0 %v2794_v58 }
  0xe8   : > { %2529 = vmatpush3.bf16.msra.mxu0 %v2802_v0  ;;  %1838 = vmatmul.mubr.bf16.vlgmr.msra.gmra.mrb[8].mxu1 %v2799_v62 }
  0xe9   : > { %2551 = vmatpush3.bf16.msra.mxu1 %v2804_v2  ;;  %2530 = vmatprep.subr.bf16.mxu0 %v2805_v3 }
  0xea   : > { %2552 = vmatprep.subr.bf16.mxu1 %v2807_v5  ;;  %1878 = vmatprep.mubr.bf16.mxu0 %v2834_v31 }
  0xeb   : > { %1919 = vmatprep.mubr.bf16.mxu1 %v2839_v35 }
  0xec   : > { %2531 = vmatpush3.bf16.msra.mxu0 %v2806_v4 }
  0xed   : > { %2553 = vmatpush3.bf16.msra.mxu1 %v2808_v6  ;;  %2532 = vmatprep.subr.bf16.mxu0 %v2809_v7 }
  0xee   : > { %2554 = vmatprep.subr.bf16.mxu1 %v2811_v9 }
  0xf0   : > { %2533 = vmatpush3.bf16.msra.mxu0 %v2810_v8 }
  0xf1   : > { %2555 = vmatpush3.bf16.msra.mxu1 %v2812_v10  ;;  %2534 = vmatprep.subr.bf16.mxu0 %v2813_v11 }
  0xf2   : > { %2556 = vmatprep.subr.bf16.mxu1 %v2815_v13 }
  0xf4   : > { %2535 = vmatpush3.bf16.msra.mxu0 %v2814_v12 }
  0xf5   : > { %2557 = vmatpush3.bf16.msra.mxu1 %v2816_v14  ;;  %2536 = vmatprep.subr.bf16.mxu0 %v2817_v15 }
  0xf6   : > { %2558 = vmatprep.subr.bf16.mxu1 %v2819_v17 }
  0xf8   : > { %2537 = vmatpush3.bf16.msra.mxu0 %v2818_v16 }
  0xf9   : > { %2559 = vmatpush3.bf16.msra.mxu1 %v2820_v18  ;;  %2538 = vmatprep.subr.bf16.mxu0 %v2821_v19 }
  0xfa   : > { %2560 = vmatprep.subr.bf16.mxu1 %v2823_v21 }
  0xfc   : > { %2539 = vmatpush3.bf16.msra.mxu0 %v2822_v20 }
  0xfd   : > { %2561 = vmatpush3.bf16.msra.mxu1 %v2824_v22  ;;  %2540 = vmatprep.subr.bf16.mxu0 %v2825_v23 }
  0xfe   : > { %2562 = vmatprep.subr.bf16.mxu1 %v2827_v25 }
 0x100   : > { %2541 = vmatpush3.bf16.msra.mxu0 %v2826_v24 }
 0x101   : > { %2563 = vmatpush3.bf16.msra.mxu1 %v2828_v26  ;;  %2542 = vmatprep.subr.bf16.mxu0 %v2829_v27 }
 0x102   : > { %2564 = vmatprep.subr.bf16.mxu1 %v2831_v29 }
 0x104   : > { %2543 = vmatpush3.bf16.msra.mxu0 %v2830_v28 }
 0x105   : > { %2565 = vmatpush3.bf16.msra.mxu1 %v2835_v32  ;;  %2572 = vmatprep.subr.bf16.mxu0 %v2836_v33 }
 0x107   : > { %1879 = vmatmul.mubr.bf16.vlgmr.msra.gmra.mrb[12].mxu0 %v2832_v30 }
 0x108   : > { %2573 = vmatpush3.bf16.msra.mxu0 %v2840_v36  ;;  %1920 = vmatmul.mubr.bf16.vlgmr.msra.gmra.mrb[12].mxu1 %v2837_v34 }
 0x109   : > { %2574 = vmatprep.subr.bf16.mxu0 %v2841_v37  ;;  %1960 = vmatprep.mubr.bf16.mxu0 %v2857_v46 }
 0x10c   : > { %2575 = vmatpush3.bf16.msra.mxu0 %v2842_v38 }
 0x10d   : > { %2576 = vmatprep.subr.bf16.mxu0 %v2843_v39 }
 0x110   : > { %2577 = vmatpush3.bf16.msra.mxu0 %v2844_v40 }
 0x111   : > { %2578 = vmatprep.subr.bf16.mxu0 %v2845_v41 }
 0x114   : > { %2579 = vmatpush3.bf16.msra.mxu0 %v2846_v42 }
 0x115   : > { %2580 = vmatprep.subr.bf16.mxu0 %v2847_v43 }
 0x118   : > { %2581 = vmatpush3.bf16.msra.mxu0 %v2848_v44 }
 0x119   : > { %2582 = vmatprep.subr.bf16.mxu0 %v2849_v45 }
 0x11c   : > { %2583 = vmatpush3.bf16.msra.mxu0 %v2850_v47 }
 0x11d   : > { %2584 = vmatprep.subr.bf16.mxu0 %v2851_v48 }
 0x120   : > { %2585 = vmatpush3.bf16.msra.mxu0 %v2852_v49 }
 0x121   : > { %2586 = vmatprep.subr.bf16.mxu0 %v2853_v50 }
 0x124   : > { %2587 = vmatpush3.bf16.msra.mxu0 %v2854_v51 }
 0x127   : > { %1961 = vmatmul.mubr.bf16.vlgmr.msra.gmra.mrb[16].mxu0 %v2855_v52 }
 0x17a   : > { %v2412_v53 = vpop.f32.mrb[0].mxu0 }
 0x17b   : > { %v2434_v54 = vpop.f32.mrb[0].mxu1  ;;  %v2413_v55 = vpop.f32.mrb[1].mxu0 }
 0x17c   : > { %v2414_v56 = vadd.f32 %v2413_v55, %v2412_v53  ;;  %v2435_v57 = vpop.f32.mrb[1].mxu1  ;;  %v2415_v58 = vpop.f32.mrb[2].mxu0  ;;  %v338_v55 = vld [vmem:[#allocation2] sm:$0xff] }
 0x17d   : > { %v2436_v59 = vadd.f32 %v2435_v57, %v2434_v54  ;;  %v2437_v60 = vpop.f32.mrb[2].mxu1  ;;  %v2416_v61 = vpop.f32.mrb[3].mxu0 }
 0x17e   : > { %v2417_v62 = vadd.f32 %v2416_v61, %v2415_v58  ;;  %v2438_v63 = vpop.f32.mrb[3].mxu1 }
 0x17f   : > { %v1676_v0 = vadd.f32 %v2436_v59, %v2414_v56  ;;  %v2439_v1 = vadd.f32 %v2438_v63, %v2437_v60  ;;  %v339_v59 = vld [vmem:[#allocation2 + $0x8] sm:$0xff]  ;;  %v2858_v63 = vld [vmem:[%s3459_s3] sm:$0xff] (!%p2381_p3)  }
 0x181   : > { %v1679_v2 = vadd.f32 %v2439_v1, %v2417_v62  ;;  %v2859_v1 = vld [vmem:[%s3459_s3 + $0x8] sm:$0xff] (!%p2381_p3)  }
 0x19a   : > { %v2456_v3 = vpop.f32.mrb[4].mxu0 }
 0x19b   : > { %v2457_v4 = vpop.f32.mrb[5].mxu0  ;;  %v2478_v9 = vpop.f32.mrb[4].mxu1 }
 0x19c   : > { %v2458_v5 = vadd.f32 %v2457_v4, %v2456_v3  ;;  %v2459_v6 = vpop.f32.mrb[6].mxu0  ;;  %v2479_v11 = vpop.f32.mrb[5].mxu1  ;;  %v2861_v3 = vld [vmem:[%s3459_s3 + $0x18] sm:$0xff] (!%p2381_p3)   ;;  %v2862_v4 = vld [vmem:[%s3459_s3 + $0x20] sm:$0xff] (!%p2381_p3)  }
 0x19d   : > { %v2460_v7 = vpop.f32.mrb[7].mxu0  ;;  %v2480_v13 = vadd.f32 %v2479_v11, %v2478_v9  ;;  %v2481_v14 = vpop.f32.mrb[6].mxu1  ;;  %v2864_v11 = vld [vmem:[%s3459_s3 + $0x30] sm:$0xff] (!%p2381_p3)  }
 0x19e   : > { %v1717_v8 = vadd.f32 %v2458_v5, %v1676_v0  ;;  %v2461_v10 = vadd.f32 %v2460_v7, %v2459_v6  ;;  %v2482_v15 = vpop.f32.mrb[7].mxu1  ;;  %v3004_v0 = vmov (!%p2381_p3), 0.0   ;;  %v2863_v5 = vld [vmem:[%s3459_s3 + $0x28] sm:$0xff] (!%p2381_p3)  }
 0x19f   : > { %v2483_v17 = vadd.f32 %v2482_v15, %v2481_v14  ;;  %2603 = vmatprep.subr.bf16.mxu0 (!%p2381_p3), %v3004_v0  ;;  %2619 = vmatprep.mubr.msk.bf16.mxu0 (!%p2381_p3), %vm3005_vm0, %v3004_v0  ;;  %v2865_v14 = vld [vmem:[%s3459_s3 + $0x38] sm:$0xff] (!%p2381_p3)  }
 0x1a0   : > { %v1720_v12 = vadd.f32 %v2461_v10, %v1679_v2  ;;  %v1758_v16 = vadd.f32 %v2480_v13, %v1717_v8  ;;  %2604 = vmatpush3.bf16.msra.mxu0 (!%p2381_p3), %v2858_v63  ;;  %v2860_v2 = vld [vmem:[%s3459_s3 + $0x10] sm:$0xff] (!%p2381_p3)  }
 0x1a1   : > { %2605 = vmatprep.subr.bf16.mxu0 (!%p2381_p3), %v3004_v0  ;;  %v2382_v8 = vld [vmem:[#allocation6] ss:$0 sm:$0xff] (!%p2381_p3) }
 0x1a2   : > { %v1761_v18 = vadd.f32 %v2483_v17, %v1720_v12 }
 0x1a4   : > { %2606 = vmatpush3.bf16.msra.mxu0 (!%p2381_p3), %v2859_v1 }
 0x1a5   : > { %2607 = vmatprep.subr.bf16.mxu0 (!%p2381_p3), %v3004_v0 }
 0x1a8   : > { %2608 = vmatpush3.bf16.msra.mxu0 (!%p2381_p3), %v2860_v2 }
 0x1a9   : > { %2609 = vmatprep.subr.bf16.mxu0 (!%p2381_p3), %v3004_v0 }
 0x1ac   : > { %2610 = vmatpush3.bf16.msra.mxu0 (!%p2381_p3), %v2861_v3 }
 0x1ad   : > { %2611 = vmatprep.subr.bf16.mxu0 (!%p2381_p3), %v3004_v0 }
 0x1b0   : > { %2612 = vmatpush3.bf16.msra.mxu0 (!%p2381_p3), %v2862_v4 }
 0x1b1   : > { %2613 = vmatprep.subr.bf16.mxu0 (!%p2381_p3), %v3004_v0 }
 0x1b4   : > { %2614 = vmatpush3.bf16.msra.mxu0 (!%p2381_p3), %v2863_v5 }
 0x1b5   : > { %2615 = vmatprep.subr.bf16.mxu0 (!%p2381_p3), %v3004_v0 }
 0x1b8   : > { %2616 = vmatpush3.bf16.msra.mxu0 (!%p2381_p3), %v2864_v11 }
 0x1b9   : > { %2617 = vmatprep.subr.bf16.mxu0 (!%p2381_p3), %v3004_v0 }
 0x1ba   : > { %v2500_v19 = vpop.f32.mrb[8].mxu0 }
 0x1bb   : > { %v2501_v20 = vpop.f32.mrb[9].mxu0  ;;  %v2522_v23 = vpop.f32.mrb[8].mxu1 }
 0x1bc   : > { %v2502_v21 = vadd.f32 %v2501_v20, %v2500_v19  ;;  %v2503_v22 = vpop.f32.mrb[10].mxu0  ;;  %v2523_v27 = vpop.f32.mrb[9].mxu1  ;;  %2618 = vmatpush3.bf16.msra.mxu0 (!%p2381_p3), %v2865_v14 }
 0x1bd   : > { %v2504_v24 = vpop.f32.mrb[11].mxu0  ;;  %v2524_v28 = vadd.f32 %v2523_v27, %v2522_v23  ;;  %v2525_v29 = vpop.f32.mrb[10].mxu1 }
 0x1be   : > { %v1799_v25 = vadd.f32 %v2502_v21, %v1758_v16  ;;  %v2505_v26 = vadd.f32 %v2504_v24, %v2503_v22  ;;  %v2526_v31 = vpop.f32.mrb[11].mxu1  ;;  %v2383_v16 = vld [vmem:[#allocation8] ss:$0 sm:$0xff] (!%p2381_p3) }
 0x1bf   : > { %v2527_v33 = vadd.f32 %v2526_v31, %v2525_v29 }
 0x1c0   : > { %v1802_v30 = vadd.f32 %v2505_v26, %v1761_v18  ;;  %v1840_v32 = vadd.f32 %v2524_v28, %v1799_v25 }
 0x1c2   : > { %v1843_v34 = vadd.f32 %v2527_v33, %v1802_v30 }
 0x1da   : > { %v2544_v35 = vpop.f32.mrb[12].mxu0 }
 0x1db   : > { %v2545_v36 = vpop.f32.mrb[13].mxu0  ;;  %v2566_v39 = vpop.f32.mrb[12].mxu1 }
 0x1dc   : > { %v2546_v37 = vadd.f32 %v2545_v36, %v2544_v35  ;;  %v2547_v38 = vpop.f32.mrb[14].mxu0  ;;  %v2567_v43 = vpop.f32.mrb[13].mxu1 }
 0x1dd   : > { %v2548_v40 = vpop.f32.mrb[15].mxu0  ;;  %v2568_v44 = vadd.f32 %v2567_v43, %v2566_v39  ;;  %v2569_v45 = vpop.f32.mrb[14].mxu1 }
 0x1de   : > { %v1881_v41 = vadd.f32 %v2546_v37, %v1840_v32  ;;  %v2549_v42 = vadd.f32 %v2548_v40, %v2547_v38  ;;  %v2570_v47 = vpop.f32.mrb[15].mxu1 }
 0x1df   : > { %v2571_v49 = vadd.f32 %v2570_v47, %v2569_v45 }
 0x1e0   : > { %v1884_v46 = vadd.f32 %v2549_v42, %v1843_v34  ;;  %v1922_v48 = vadd.f32 %v2568_v44, %v1881_v41 }
 0x1e2   : > { %v1925_v50 = vadd.f32 %v2571_v49, %v1884_v46 }
 0x1fa   : > { %v2588_v51 = vpop.f32.mrb[16].mxu0 }
 0x1fb   : > { %v2589_v52 = vpop.f32.mrb[17].mxu0 }
 0x1fc   : > { %v2590_v53 = vadd.f32 %v2589_v52, %v2588_v51  ;;  %v2591_v54 = vpop.f32.mrb[18].mxu0 }
 0x1fd   : > { %v2592_v56 = vpop.f32.mrb[19].mxu0 }
 0x1fe   : > { %v1963_v57 = vadd.f32 %v2590_v53, %v1922_v48  ;;  %v2593_v58 = vadd.f32 %v2592_v56, %v2591_v54  ;;  %1976 = sbr.rel (%p2381_p3) target bundleno = 1067 (0x42b), region = 83 }
 0x200   : > { %v1969_v60 = vadd.f32 %v1963_v57, %v338_v55  ;;  %v1966_v61 = vadd.f32 %v2593_v58, %v1925_v50 }
 0x202   : > { %1971 = vst [vmem:[#allocation2] sm:$0xff] %v1969_v60  ;;  %v1970_v62 = vadd.f32 %v1966_v61, %v339_v59 }
 0x204   : > { %1972 = vst [vmem:[#allocation2 + $0x8] sm:$0xff] %v1970_v62 }
 0x209   : > { %v1977_v6 = vld [vmem:[#allocation2] sm:$0xff] }
 0x20a   : > { %v1986_v9 = vadd.f32 %v2382_v8, %v1977_v6 }
 0x20b   : > { %v1978_v7 = vld [vmem:[#allocation2 + $0x8] sm:$0xff] }
 0x20c   : > { %v1987_v10 = vadd.f32 %v2382_v8, %v1978_v7  ;;  %v1988_v12 = vmax.f32 %v1986_v9, 0.0 }
 0x20e   : > { %v1989_v13 = vmax.f32 %v1987_v10, 0.0 }
 0x210   : > { %v1990_v15 = vpack.c.bf16 %v1989_v13, %v1988_v12 }
 0x212   : > { %2620 = vmatmul.mubr.bf16.vlgmr.msra.gmra.mrb[0].mxu0 %v1990_v15 }
 0x2e5   : > { %v2096_v17 = vpop.f32.mrb[0].mxu0 }
 0x2e6   : > { %v2097_v18 = vadd.f32 %v2383_v16, %v2096_v17  ;;  %v2621_v19 = vpop.f32.mrb[1].mxu0 }
 0x2e7   : > { %v2099_v20 = vpop.f32.mrb[2].mxu0 }
 0x2e8   : > { %v2100_v21 = vadd.f32 %v2383_v16, %v2099_v20  ;;  %v2622_v22 = vpop.f32.mrb[3].mxu0  ;;  %v2104_v23 = vsel %vm2103_vm1, %v2097_v18, -inf }
 0x2e9   : > { %2105 = vmax.xlane.f32.xlu0 %v2104_v23 }
 0x2ea   : > { %v2107_v24 = vsel %vm2103_vm1, %v2100_v21, -inf }
 0x2ed   : > { %2108 = vmax.xlane.f32.xlu0 %v2107_v24 }
 0x376   : > { %v2106_v25 = vpop.xlane.xlu0 %2105 }
 0x377   : > { %v2110_v26 = vsub.f32 %v2097_v18, %v2106_v25 }
 0x379   : > { %v2112_v27 = vmul.f32 1.442695, %v2110_v26 }
 0x37a   : > { %v2109_v28 = vpop.xlane.xlu0 %2108 }
 0x37b   : > { %2866 = vpow2.f32 %v2112_v27  ;;  %v2111_v29 = vsub.f32 %v2100_v21, %v2109_v28 }
 0x37d   : > { %v2114_v30 = vmul.f32 1.442695, %v2111_v29 }
 0x37f   : > { %2868 = vpow2.f32 %v2114_v30 }
 0x385   : > { %v2867_v31 = vpop.eup %2866 }
 0x386   : > { %v2116_v32 = vsel %vm2103_vm1, %v2867_v31, 0.0 }
 0x387   : > { %2117 = vadd.xlane.f32.xlu1 %v2116_v32 }
 0x389   : > { %v2869_v33 = vpop.eup %2868 }
 0x38a   : > { %v2119_v34 = vsel %vm2103_vm1, %v2869_v33, 0.0 }
 0x38b   : > { %2120 = vadd.xlane.f32.xlu1 %v2119_v34 }
 0x414   : > { %v2118_v35 = vpop.xlane.xlu1 %2117 }
 0x415   : > { %2870 = vlog2.f32 %v2118_v35 }
 0x418   : > { %v2121_v36 = vpop.xlane.xlu1 %2120 }
 0x419   : > { %2872 = vlog2.f32 %v2121_v36 }
 0x41f   : > { %v2871_v37 = vpop.eup %2870 }
 0x420   : > { %v2123_v38 = vmul.f32 0.6931472, %v2871_v37 }
 0x422   : > { %v2126_v39 = vadd.f32 %v2123_v38, %v2106_v25 }
 0x423   : > { %v2873_v40 = vpop.eup %2872 }
 0x424   : > { %v2128_v41 = vsub.f32 %v2097_v18, %v2126_v39  ;;  %v2125_v42 = vmul.f32 0.6931472, %v2873_v40 }
 0x426   : > { %2130 = vst.msk [vmem:[%s3461_s5] sm:$0xff] %vm2103_vm1, %v2128_v41  ;;  %v2127_v43 = vadd.f32 %v2125_v42, %v2109_v28 }
 0x428   : > { %v2129_v44 = vsub.f32 %v2100_v21, %v2127_v43 }
 0x42a   : > { %2131 = vst.msk [vmem:[%s3461_s5 + $0x8] sm:$0xff] %vm2103_vm1, %v2129_v44 }
 0x42b PF: > { %p16_p6 = scmp.ge.s32.totalorder %s3058_s23, 6   ;;  %s3477_s18 = smov %s2988_s19 }
 0x42c   : > { %s3478_s19 = smov %s2992_s20  ;;  %s3479_s20 = smov %s3068_s26 }
 0x42d   : > { %s3480_s21 = smov %s3058_s23  ;;  %18 = sbr.rel (!%p16_p6) target bundleno = 4 (0x4), region = 123 }
 0x434   :  { %2143 = vsyncpa [#allocation5], 1 }
 0x435   :  { %2145 = vsyncpa [#allocation5 + $0x1], 1 }
 0x436   :  { %2146 = vsyncpa [#allocation7], 1 }

</bundles_post_ra>
